<compile_context>
chip_gen: v7x
topology: tpu7x:2x2x1
jax: 0.10.0
libtpu: 0.0.40
codegen_flags: <defaults>
</compile_context>

<pallas_src>
import jax
import jax.numpy as jnp
from jax import lax
from jax.experimental import pallas as pl
from jax.experimental.pallas import tpu as pltpu


def _round_up(x, m):
    return (x + m - 1) // m * m


_VMEM_LIMIT_CACHE = [None]


def _vmem_limit():
    """~3/4 of physical VMEM, capped at 100 MiB (v5e/v6e ~96 MiB, v7x ~48 MiB)."""
    if _VMEM_LIMIT_CACHE[0] is None:
        try:
            cap = int(pltpu.get_tpu_info().vmem_capacity_bytes)
            _VMEM_LIMIT_CACHE[0] = max(32 << 20, min(3 * cap // 4, 100 << 20))
        except Exception:
            _VMEM_LIMIT_CACHE[0] = 48 << 20
    return _VMEM_LIMIT_CACHE[0]


def _pick_bt(bsz, per_image_bytes, target_bytes=4 << 20):
    """Images per grid block: big enough blocks for small images, 1 for large."""
    bt = int(min(bsz, max(1, target_bytes // max(per_image_bytes, 1))))
    while bsz % bt:
        bt -= 1
    return bt


def _chunk_loop(n_chunks, body):
    """body(c) for c in [0, n_chunks): unrolled when short, fori_loop when long."""
    if n_chunks <= 4:
        for c in range(n_chunks):
            body(c)
    else:
        def fbody(c, carry):
            body(c)
            return carry
        lax.fori_loop(0, n_chunks, fbody, 0)


def _dyn(i0):
    return i0 if isinstance(i0, int) else pl.multiple_of(i0, 8)


# ----------------------------------------------------------------------------
# Pallas kernels
# ----------------------------------------------------------------------------

def _make_conv1_kernel(bt, cm, n_chunks):
    """Pixel-folded im2col conv1: per chunk relu(x @ Wbd + b), dense 128 lanes."""
    def kernel(x_ref, w_ref, b_ref, o_ref):
        w = w_ref[...]
        b = b_ref[...]
        for bi in range(bt):
            def body(c, bi=bi):
                i0 = _dyn(c * cm)
                xs = x_ref[bi, pl.ds(i0, cm), :]
                y = jnp.dot(xs, w, preferred_element_type=jnp.float32)
                y = jnp.maximum(y + b, 0.0)
                o_ref[bi, pl.ds(i0, cm), :] = y.astype(o_ref.dtype)
            _chunk_loop(n_chunks, body)
    return kernel


def _make_s2d_conv_kernel(bt, cm, n_chunks, cout, ws):
    """kn2row stride-2 conv over an s2d image: one (M,Cin)@(Cin,4*Cout) dot per
    chunk, then 4 sublane-shifted slice-adds, bias, ReLU."""
    halo = ws + 1
    def kernel(x_ref, w_ref, b_ref, o_ref):
        w = w_ref[...]
        b = b_ref[...]
        for bi in range(bt):
            def body(c, bi=bi):
                i0 = _dyn(c * cm)
                xs = x_ref[bi, pl.ds(i0, cm + halo), :]
                r = jnp.dot(xs, w, preferred_element_type=jnp.float32)
                y = (r[0:cm, 0:cout]
                     + r[1:cm + 1, cout:2 * cout]
                     + r[ws:cm + ws, 2 * cout:3 * cout]
                     + r[ws + 1:cm + ws + 1, 3 * cout:4 * cout])
                y = jnp.maximum(y + b, 0.0)
                o_ref[bi, pl.ds(i0, cm), :] = y.astype(o_ref.dtype)
            _chunk_loop(n_chunks, body)
    return kernel


def _make_s2d_conv_pool_linear_kernel(bt, m_out, cout, ws, wo, inv_area):
    """Last conv (kn2row) + ReLU + masked global-average-pool + Linear head."""
    halo = ws + 1
    def kernel(x_ref, w_ref, b_ref, wl_ref, bl_ref, o_ref):
        w = w_ref[...]
        b = b_ref[...]
        wl = wl_ref[...]
        bl = bl_ref[...]
        col = lax.broadcasted_iota(jnp.int32, (m_out, 1), 0) % ws
        valid = col < wo                                   # garbage-column mask
        for bi in range(bt):
            xs = x_ref[bi, pl.ds(0, m_out + halo), :]
            r = jnp.dot(xs, w, preferred_element_type=jnp.float32)
            y = (r[0:m_out, 0:cout]
                 + r[1:m_out + 1, cout:2 * cout]
                 + r[ws:m_out + ws, 2 * cout:3 * cout]
                 + r[ws + 1:m_out + ws + 1, 3 * cout:4 * cout])
            y = jnp.maximum(y + b, 0.0)
            pooled = jnp.sum(jnp.where(valid, y, 0.0), axis=0,
                             keepdims=True) * inv_area      # (1, 128)
            out = jnp.dot(pooled, wl, preferred_element_type=jnp.float32) + bl
            o_ref[bi] = out.astype(o_ref.dtype)
    return kernel


# ----------------------------------------------------------------------------
# pallas_call wrappers
# ----------------------------------------------------------------------------

def _conv1_call(x_fold, wbd, b, cm, n_chunks):
    bsz, mq, k4 = x_fold.shape
    bt = _pick_bt(bsz, mq * (k4 * 2 + 128 * 2))
    flops = 2 * bsz * mq * k4 * 128
    bytes_acc = x_fold.size * 2 + wbd.size * 2 + b.size * 4 + bsz * mq * 128 * 2
    return pl.pallas_call(
        _make_conv1_kernel(bt, cm, n_chunks),
        out_shape=jax.ShapeDtypeStruct((bsz, mq, 128), jnp.bfloat16),
        grid=(bsz // bt,),
        in_specs=[
            pl.BlockSpec((bt, mq, k4), lambda i: (i, 0, 0)),
            pl.BlockSpec((k4, 128), lambda i: (0, 0)),
            pl.BlockSpec((1, 128), lambda i: (0, 0)),
        ],
        out_specs=pl.BlockSpec((bt, mq, 128), lambda i: (i, 0, 0)),
        compiler_params=pltpu.CompilerParams(
            dimension_semantics=("parallel",),
            vmem_limit_bytes=_vmem_limit()),
        cost_estimate=pl.CostEstimate(flops=flops, transcendentals=0,
                                      bytes_accessed=bytes_acc),
    )(x_fold, wbd, b)


def _conv2_call(x_flat, w_cat, b, cout, ws, m_out_p, cm, n_chunks):
    bsz, mp, cin4 = x_flat.shape
    bt = _pick_bt(bsz, mp * cin4 * 2 + m_out_p * cout * 2)
    flops = 2 * bsz * n_chunks * (cm + ws + 1) * cin4 * 4 * cout
    bytes_acc = x_flat.size * 2 + w_cat.size * 2 + b.size * 4 + bsz * m_out_p * cout * 2
    return pl.pallas_call(
        _make_s2d_conv_kernel(bt, cm, n_chunks, cout, ws),
        out_shape=jax.ShapeDtypeStruct((bsz, m_out_p, cout), jnp.bfloat16),
        grid=(bsz // bt,),
        in_specs=[
            pl.BlockSpec((bt, mp, cin4), lambda i: (i, 0, 0)),
            pl.BlockSpec((cin4, 4 * cout), lambda i: (0, 0)),
            pl.BlockSpec((1, cout), lambda i: (0, 0)),
        ],
        out_specs=pl.BlockSpec((bt, m_out_p, cout), lambda i: (i, 0, 0)),
        compiler_params=pltpu.CompilerParams(
            dimension_semantics=("parallel",),
            vmem_limit_bytes=_vmem_limit()),
        cost_estimate=pl.CostEstimate(flops=flops, transcendentals=0,
                                      bytes_accessed=bytes_acc),
    )(x_flat, w_cat, b)


def _conv3_call(x_flat, w_cat, b, wl, bl, cout, ws, wo, m_out, inv_area):
    bsz, mp, cin4 = x_flat.shape
    odim = wl.shape[1]
    bt = _pick_bt(bsz, mp * cin4 * 2)
    flops = 2 * bsz * ((m_out + ws + 1) * cin4 * 4 * cout + cout * odim)
    bytes_acc = (x_flat.size * 2 + w_cat.size * 2
                 + (b.size + wl.size + bl.size) * 4 + bsz * odim * 4)
    return pl.pallas_call(
        _make_s2d_conv_pool_linear_kernel(bt, m_out, cout, ws, wo, inv_area),
        out_shape=jax.ShapeDtypeStruct((bsz, 1, odim), jnp.float32),
        grid=(bsz // bt,),
        in_specs=[
            pl.BlockSpec((bt, mp, cin4), lambda i: (i, 0, 0)),
            pl.BlockSpec((cin4, 4 * cout), lambda i: (0, 0)),
            pl.BlockSpec((1, cout), lambda i: (0, 0)),
            pl.BlockSpec((cout, odim), lambda i: (0, 0)),
            pl.BlockSpec((1, odim), lambda i: (0, 0)),
        ],
        out_specs=pl.BlockSpec((bt, 1, odim), lambda i: (i, 0, 0)),
        compiler_params=pltpu.CompilerParams(
            dimension_semantics=("parallel",),
            vmem_limit_bytes=_vmem_limit()),
        cost_estimate=pl.CostEstimate(flops=flops, transcendentals=0,
                                      bytes_accessed=bytes_acc),
    )(x_flat, w_cat, b, wl, bl)


# ----------------------------------------------------------------------------
# Wrapper-side layout plumbing (cheap XLA relayouts)
# ----------------------------------------------------------------------------

def _pad1_s2d(x):
    """zero-pad spatial by 1, then space-to-depth(2): (B,H,W,C)->(B,Hs,Ws,4C).
    Channel order inside 4C is (row_parity, col_parity, c)."""
    bsz, h, w, c = x.shape
    hp, wp = h + 2, w + 2
    x = jnp.pad(x, ((0, 0), (1, 1 + hp % 2), (1, 1 + wp % 2), (0, 0)))
    hs, ws = (hp + hp % 2) // 2, (wp + wp % 2) // 2
    x = x.reshape(bsz, hs, 2, ws, 2, c)
    x = x.transpose(0, 1, 3, 2, 4, 5).reshape(bsz, hs, ws, 4 * c)
    return x


def _s2d_flat(x, m_out_p, halo):
    """(B,Hs,Ws,C4) -> (B,Mp,C4) flattened rows, end-padded for chunk+halo slices."""
    bsz, hs, ws, c4 = x.shape
    mp = _round_up(m_out_p + halo, 8)
    xf = x.reshape(bsz, hs * ws, c4)
    return jnp.pad(xf, ((0, 0), (0, mp - hs * ws), (0, 0)))


# ----------------------------------------------------------------------------
# Parameters (canonical HWIO layout) + packing into kernel layouts
# ----------------------------------------------------------------------------

def init_params(key, input_dim=3, output_dim=64):
    """Canonical params: conv weights in HWIO (kh,kw,cin,cout), linear (in,out).
    (To load PyTorch weights: conv OIHW -> transpose(2,3,1,0); linear -> .T.)"""
    ks = jax.random.split(key, 8)

    def conv_w(k, cin, cout):
        return (jax.random.normal(k, (3, 3, cin, cout), jnp.float32)
                / jnp.sqrt(9.0 * cin))

    return {
        "w1": conv_w(ks[0], input_dim, 32),
        "b1": jax.random.normal(ks[1], (32,), jnp.float32) * 0.01,
        "w2": conv_w(ks[2], 32, 64),
        "b2": jax.random.normal(ks[3], (64,), jnp.float32) * 0.01,
        "w3": conv_w(ks[4], 64, 128),
        "b3": jax.random.normal(ks[5], (128,), jnp.float32) * 0.01,
        "wl": (jax.random.normal(ks[6], (128, output_dim), jnp.float32)
               / jnp.sqrt(128.0)),
        "bl": jax.random.normal(ks[7], (output_dim,), jnp.float32) * 0.01,
    }


def _pack_stride2_weight(w):
    """(3,3,cin,cout) HWIO -> (4, 4*cin, cout) taps matching the s2d layout."""
    _, _, cin, cout = w.shape
    w4 = jnp.pad(w, ((0, 1), (0, 1), (0, 0), (0, 0)))   # 3x3 -> 4x4 (zeros)
    w6 = w4.reshape(2, 2, 2, 2, cin, cout)              # (dh, ph, dw, pw, ci, co)
    w6 = w6.transpose(0, 2, 1, 3, 4, 5)                 # (dh, dw, ph, pw, ci, co)
    return w6.reshape(4, 4 * cin, cout)


def _cat_taps(w):
    """taps (4,K,C) -> kn2row weight (K, 4*C): columns [tap0 | tap1 | tap2 | tap3]."""
    taps = _pack_stride2_weight(w)
    return jnp.transpose(taps, (1, 0, 2)).reshape(taps.shape[1], 4 * taps.shape[2])


def pack_params(params, input_dim=3):
    """Re-layout canonical params into the kernels' layouts (bf16 conv weights)."""
    k1 = 9 * input_dim
    w1 = params["w1"].reshape(k1, 32)                    # (9*Cin, 32), row=(kh,kw,ci)
    wbd = jnp.zeros((4 * k1, 128), params["w1"].dtype)   # block-diag 4-pixel fold
    for j in range(4):
        wbd = wbd.at[j * k1:(j + 1) * k1, j * 32:(j + 1) * 32].set(w1)
    return {
        "w1": wbd.astype(jnp.bfloat16),                               # (4*9C, 128)
        "b1": jnp.tile(params["b1"], 4).reshape(1, 128).astype(jnp.float32),
        "w2": _cat_taps(params["w2"]).astype(jnp.bfloat16),           # (128, 256)
        "b2": params["b2"].reshape(1, 64).astype(jnp.float32),
        "w3": _cat_taps(params["w3"]).astype(jnp.bfloat16),           # (256, 512)
        "b3": params["b3"].reshape(1, 128).astype(jnp.float32),
        "wl": params["wl"].astype(jnp.float32),
        "bl": params["bl"].reshape(1, -1).astype(jnp.float32),
    }


# ----------------------------------------------------------------------------
# Forward pass
# ----------------------------------------------------------------------------

def simple_motion_predictor(packed, images_nchw):
    """images: [B, C, H, W] float32  ->  motion features [B, output_dim]."""
    bsz, chn, h, w = images_nchw.shape
    x = jnp.transpose(images_nchw, (0, 2, 3, 1)).astype(jnp.bfloat16)   # NHWC

    # ---- Conv2d(C,32,3,p=1)+ReLU: wrapper im2col (tiny Cin) + 4-pixel fold ----
    k1 = 9 * chn
    xp = jnp.pad(x, ((0, 0), (1, 1), (1, 1), (0, 0)))
    cols = jnp.concatenate(
        [xp[:, kh:kh + h, kw:kw + w, :] for kh in range(3) for kw in range(3)],
        axis=-1).reshape(bsz, h * w, k1)                                 # (B,M,9C)
    m = h * w
    mq = _round_up(m, 4) // 4
    cm1 = min(512, _round_up(mq, 8))
    mq_p = _round_up(mq, cm1)
    cols = jnp.pad(cols, ((0, 0), (0, 4 * mq_p - m), (0, 0)))
    x_fold = cols.reshape(bsz, mq_p, 4 * k1)         # free: same bytes as (4*mq_p, 9C)
    y = _conv1_call(x_fold, packed["w1"], packed["b1"], cm1, mq_p // cm1)
    y = y.reshape(bsz, 4 * mq_p, 32)[:, :m, :].reshape(bsz, h, w, 32)    # free repack

    # ---- Conv2d(32,64,3,s=2,p=1)+ReLU: s2d + kn2row (N=256) -------------------
    xs = _pad1_s2d(y)                                                    # (B,hs,ws,128)
    ws2 = xs.shape[2]
    ho, wo = -(-h // 2), -(-w // 2)
    m_out = ho * ws2
    cm2 = min(1024, _round_up(m_out, 8))
    m_out_p = _round_up(m_out, cm2)
    x_flat = _s2d_flat(xs, m_out_p, ws2 + 1)
    y = _conv2_call(x_flat, packed["w2"], packed["b2"], 64, ws2, m_out_p,
                    cm2, m_out_p // cm2)
    y = y[:, :m_out, :].reshape(bsz, ho, ws2, 64)[:, :, :wo, :]          # (B,ho,wo,64)

    # ---- Conv2d(64,128,3,s=2,p=1)+ReLU + AvgPool(1) + Linear: one kernel ------
    xs = _pad1_s2d(y)                                                    # (B,hs,ws,256)
    ws3 = xs.shape[2]
    ho3, wo3 = -(-ho // 2), -(-wo // 2)
    m_out3 = ho3 * ws3
    x_flat = _s2d_flat(xs, m_out3, ws3 + 1)
    out = _conv3_call(x_flat, packed["w3"], packed["b3"], packed["wl"],
                      packed["bl"], 128, ws3, wo3, m_out3, 1.0 / (ho3 * wo3))
    return out.reshape(bsz, -1)


# ----------------------------------------------------------------------------
# Pure-JAX reference (f32) for correctness verification
# ----------------------------------------------------------------------------

def reference_forward(params, images_nchw):
    dn = ("NHWC", "HWIO", "NHWC")
    p = lax.Precision.HIGHEST
    x = jnp.transpose(images_nchw, (0, 2, 3, 1))
    x = jax.nn.relu(lax.conv_general_dilated(
        x, params["w1"], (1, 1), ((1, 1), (1, 1)), dimension_numbers=dn,
        precision=p) + params["b1"])
    x = jax.nn.relu(lax.conv_general_dilated(
        x, params["w2"], (2, 2), ((1, 1), (1, 1)), dimension_numbers=dn,
        precision=p) + params["b2"])
    x = jax.nn.relu(lax.conv_general_dilated(
        x, params["w3"], (2, 2), ((1, 1), (1, 1)), dimension_numbers=dn,
        precision=p) + params["b3"])
    pooled = jnp.mean(x, axis=(1, 2))
    return jnp.dot(pooled, params["wl"], precision=p) + params["bl"]


# ----------------------------------------------------------------------------
if __name__ == "__main__":
    key = jax.random.PRNGKey(0)
    k_par, k_img = jax.random.split(key)

    params = init_params(k_par, input_dim=3, output_dim=64)
    packed = pack_params(params, input_dim=3)
    fwd = jax.jit(simple_motion_predictor)

    # Small square test.
    B, C, H, W = 2, 3, 16, 16
    images = jax.random.normal(k_img, (B, C, H, W), jnp.float32)
    out = jax.block_until_ready(fwd(packed, images))
    assert out.shape == (B, 64), out.shape
    ref = reference_forward(params, images)
    err = float(jnp.max(jnp.abs(out - ref)))
    scale = max(1.0, float(jnp.max(jnp.abs(ref))))
    assert err <= 0.05 * scale, f"mismatch @16x16: max |err| = {err}"

    # Non-square, odd sizes: exercises pixel-fold padding, garbage columns and
    # the space-to-depth parity padding paths.
    B2, H2, W2 = 2, 13, 10
    images2 = jax.random.normal(jax.random.PRNGKey(1), (B2, C, H2, W2), jnp.float32)
    out2 = jax.block_until_ready(fwd(packed, images2))
    assert out2.shape == (B2, 64), out2.shape
    ref2 = reference_forward(params, images2)
    err2 = float(jnp.max(jnp.abs(out2 - ref2)))
    scale2 = max(1.0, float(jnp.max(jnp.abs(ref2))))
    assert err2 <= 0.05 * scale2, f"mismatch @13x10: max |err| = {err2}"

    print("KERNEL_OK")
</pallas_src>

<mosaic_0001>
module attributes {stable_mosaic.version = 11 : i64} {
  func.func @kernel(%arg0: i32, %arg1: memref<2x64x108xbf16, #tpu.memory_space<vmem>>, %arg2: memref<108x128xbf16, #tpu.memory_space<vmem>>, %arg3: memref<1x128xf32, #tpu.memory_space<vmem>>, %arg4: memref<2x64x128xbf16, #tpu.memory_space<vmem>>) attributes {dimension_semantics = [#tpu.dimension_semantics<parallel>], iteration_bounds = array<i64: 1>, scalar_prefetch = 0 : i64, scratch_operands = 0 : i64, tpu.core_type = #tpu.core_type<tc>, window_params = [{transform_indices = @transform_0, window_bounds = array<i64: 2, 64, 108>}, {pipeline_mode = #tpu.pipeline_mode<synchronous>, transform_indices = @transform_1, window_bounds = array<i64: 108, 128>}, {pipeline_mode = #tpu.pipeline_mode<synchronous>, transform_indices = @transform_2, window_bounds = array<i64: 1, 128>}, {transform_indices = @transform_3, window_bounds = array<i64: 2, 64, 128>}]} {
    %c0 = arith.constant 0 : index
    %c0_0 = arith.constant 0 : index
    %0 = vector.load %arg2[%c0, %c0_0] : memref<108x128xbf16, #tpu.memory_space<vmem>>, vector<108x128xbf16>
    %c0_1 = arith.constant 0 : index
    %c0_2 = arith.constant 0 : index
    %1 = vector.load %arg3[%c0_1, %c0_2] : memref<1x128xf32, #tpu.memory_space<vmem>>, vector<1x128xf32>
    %c0_3 = arith.constant 0 : index
    %c0_4 = arith.constant 0 : index
    %c0_5 = arith.constant 0 : index
    %2 = vector.load %arg1[%c0_3, %c0_4, %c0_5] : memref<2x64x108xbf16, #tpu.memory_space<vmem>>, vector<1x64x108xbf16>
    %3 = vector.shape_cast %2 : vector<1x64x108xbf16> to vector<64x108xbf16>
    %cst = arith.constant dense<0.000000e+00> : vector<64x128xf32>
    %4 = tpu.matmul %3, %0, %cst {dimension_numbers = #tpu.dot_dimension_numbers<[1], [0], [0], [1], [0, 0, 1, 1], [], []>} : vector<64x108xbf16>, vector<108x128xbf16>, vector<64x128xf32> -> vector<64x128xf32>
    %5 = vector.broadcast %1 : vector<1x128xf32> to vector<64x128xf32>
    %6 = arith.addf %4, %5 : vector<64x128xf32>
    %cst_6 = arith.constant 0.000000e+00 : f32
    %7 = vector.broadcast %cst_6 : f32 to vector<64x128xf32>
    %8 = arith.maximumf %6, %7 : vector<64x128xf32>
    %9 = arith.truncf %8 : vector<64x128xf32> to vector<64x128xbf16>
    %c0_7 = arith.constant 0 : index
    %c0_8 = arith.constant 0 : index
    %c0_9 = arith.constant 0 : index
    %10 = vector.load %arg4[%c0_7, %c0_8, %c0_9] : memref<2x64x128xbf16, #tpu.memory_space<vmem>>, vector<1x64x128xbf16>
    %11 = vector.shape_cast %10 : vector<1x64x128xbf16> to vector<64x128xbf16>
    %12 = vector.shape_cast %9 : vector<64x128xbf16> to vector<1x64x128xbf16>
    tpu.vector_store %arg4[%c0_7, %c0_8, %c0_9], %12 {strides = array<i32>} : memref<2x64x128xbf16, #tpu.memory_space<vmem>>, vector<1x64x128xbf16>,
    %c1 = arith.constant 1 : index
    %c0_10 = arith.constant 0 : index
    %c0_11 = arith.constant 0 : index
    %13 = vector.load %arg1[%c1, %c0_10, %c0_11] : memref<2x64x108xbf16, #tpu.memory_space<vmem>>, vector<1x64x108xbf16>
    %14 = vector.shape_cast %13 : vector<1x64x108xbf16> to vector<64x108xbf16>
    %cst_12 = arith.constant dense<0.000000e+00> : vector<64x128xf32>
    %15 = tpu.matmul %14, %0, %cst_12 {dimension_numbers = #tpu.dot_dimension_numbers<[1], [0], [0], [1], [0, 0, 1, 1], [], []>} : vector<64x108xbf16>, vector<108x128xbf16>, vector<64x128xf32> -> vector<64x128xf32>
    %16 = vector.broadcast %1 : vector<1x128xf32> to vector<64x128xf32>
    %17 = arith.addf %15, %16 : vector<64x128xf32>
    %cst_13 = arith.constant 0.000000e+00 : f32
    %18 = vector.broadcast %cst_13 : f32 to vector<64x128xf32>
    %19 = arith.maximumf %17, %18 : vector<64x128xf32>
    %20 = arith.truncf %19 : vector<64x128xf32> to vector<64x128xbf16>
    %c1_14 = arith.constant 1 : index
    %c0_15 = arith.constant 0 : index
    %c0_16 = arith.constant 0 : index
    %21 = vector.load %arg4[%c1_14, %c0_15, %c0_16] : memref<2x64x128xbf16, #tpu.memory_space<vmem>>, vector<1x64x128xbf16>
    %22 = vector.shape_cast %21 : vector<1x64x128xbf16> to vector<64x128xbf16>
    %23 = vector.shape_cast %20 : vector<64x128xbf16> to vector<1x64x128xbf16>
    tpu.vector_store %arg4[%c1_14, %c0_15, %c0_16], %23 {strides = array<i32>} : memref<2x64x128xbf16, #tpu.memory_space<vmem>>, vector<1x64x128xbf16>,
    return
  }
  func.func @transform_0(%arg0: i32) -> (i32, i32, i32) {
    %c0_i32 = arith.constant 0 : i32
    %c0_i32_0 = arith.constant 0 : i32
    %c0_i32_1 = arith.constant 0 : i32
    return %arg0, %c0_i32, %c0_i32_0 : i32, i32, i32
  }
  func.func @transform_1(%arg0: i32) -> (i32, i32) {
    %c0_i32 = arith.constant 0 : i32
    %c0_i32_0 = arith.constant 0 : i32
    %c0_i32_1 = arith.constant 0 : i32
    return %c0_i32, %c0_i32_0 : i32, i32
  }
  func.func @transform_2(%arg0: i32) -> (i32, i32) {
    %c0_i32 = arith.constant 0 : i32
    %c0_i32_0 = arith.constant 0 : i32
    %c0_i32_1 = arith.constant 0 : i32
    return %c0_i32, %c0_i32_0 : i32, i32
  }
  func.func @transform_3(%arg0: i32) -> (i32, i32, i32) {
    %c0_i32 = arith.constant 0 : i32
    %c0_i32_0 = arith.constant 0 : i32
    %c0_i32_1 = arith.constant 0 : i32
    return %arg0, %c0_i32, %c0_i32_0 : i32, i32, i32
  }
}

module attributes {stable_mosaic.version = 11 : i64} {
  func.func @kernel(%arg0: i32, %arg1: memref<2x88x128xbf16, #tpu.memory_space<vmem>>, %arg2: memref<128x256xbf16, #tpu.memory_space<vmem>>, %arg3: memref<1x64xf32, #tpu.memory_space<vmem>>, %arg4: memref<2x72x64xbf16, #tpu.memory_space<vmem>>) attributes {dimension_semantics = [#tpu.dimension_semantics<parallel>], iteration_bounds = array<i64: 1>, scalar_prefetch = 0 : i64, scratch_operands = 0 : i64, tpu.core_type = #tpu.core_type<tc>, window_params = [{transform_indices = @transform_0, window_bounds = array<i64: 2, 88, 128>}, {pipeline_mode = #tpu.pipeline_mode<synchronous>, transform_indices = @transform_1, window_bounds = array<i64: 128, 256>}, {pipeline_mode = #tpu.pipeline_mode<synchronous>, transform_indices = @transform_2, window_bounds = array<i64: 1, 64>}, {transform_indices = @transform_3, window_bounds = array<i64: 2, 72, 64>}]} {
    %c0 = arith.constant 0 : index
    %c0_0 = arith.constant 0 : index
    %0 = vector.load %arg2[%c0, %c0_0] : memref<128x256xbf16, #tpu.memory_space<vmem>>, vector<128x256xbf16>
    %c0_1 = arith.constant 0 : index
    %c0_2 = arith.constant 0 : index
    %1 = vector.load %arg3[%c0_1, %c0_2] : memref<1x64xf32, #tpu.memory_space<vmem>>, vector<1x64xf32>
    %c0_3 = arith.constant 0 : index
    %c0_4 = arith.constant 0 : index
    %c0_5 = arith.constant 0 : index
    %2 = vector.load %arg1[%c0_3, %c0_4, %c0_5] : memref<2x88x128xbf16, #tpu.memory_space<vmem>>, vector<1x82x128xbf16>
    %3 = vector.shape_cast %2 : vector<1x82x128xbf16> to vector<82x128xbf16>
    %cst = arith.constant dense<0.000000e+00> : vector<82x256xf32>
    %4 = tpu.matmul %3, %0, %cst {dimension_numbers = #tpu.dot_dimension_numbers<[1], [0], [0], [1], [0, 0, 1, 1], [], []>} : vector<82x128xbf16>, vector<128x256xbf16>, vector<82x256xf32> -> vector<82x256xf32>
    %5 = vector.extract_strided_slice %4 {offsets = [0, 0], sizes = [72, 64], strides = [1, 1]} : vector<82x256xf32> to vector<72x64xf32>
    %6 = vector.extract_strided_slice %4 {offsets = [1, 64], sizes = [72, 64], strides = [1, 1]} : vector<82x256xf32> to vector<72x64xf32>
    %7 = arith.addf %5, %6 : vector<72x64xf32>
    %8 = vector.extract_strided_slice %4 {offsets = [9, 128], sizes = [72, 64], strides = [1, 1]} : vector<82x256xf32> to vector<72x64xf32>
    %9 = arith.addf %7, %8 : vector<72x64xf32>
    %10 = vector.extract_strided_slice %4 {offsets = [10, 192], sizes = [72, 64], strides = [1, 1]} : vector<82x256xf32> to vector<72x64xf32>
    %11 = arith.addf %9, %10 : vector<72x64xf32>
    %12 = vector.broadcast %1 : vector<1x64xf32> to vector<72x64xf32>
    %13 = arith.addf %11, %12 : vector<72x64xf32>
    %cst_6 = arith.constant 0.000000e+00 : f32
    %14 = vector.broadcast %cst_6 : f32 to vector<72x64xf32>
    %15 = arith.maximumf %13, %14 : vector<72x64xf32>
    %16 = arith.truncf %15 : vector<72x64xf32> to vector<72x64xbf16>
    %c0_7 = arith.constant 0 : index
    %c0_8 = arith.constant 0 : index
    %c0_9 = arith.constant 0 : index
    %17 = vector.load %arg4[%c0_7, %c0_8, %c0_9] : memref<2x72x64xbf16, #tpu.memory_space<vmem>>, vector<1x72x64xbf16>
    %18 = vector.shape_cast %17 : vector<1x72x64xbf16> to vector<72x64xbf16>
    %19 = vector.shape_cast %16 : vector<72x64xbf16> to vector<1x72x64xbf16>
    tpu.vector_store %arg4[%c0_7, %c0_8, %c0_9], %19 {strides = array<i32>} : memref<2x72x64xbf16, #tpu.memory_space<vmem>>, vector<1x72x64xbf16>,
    %c1 = arith.constant 1 : index
    %c0_10 = arith.constant 0 : index
    %c0_11 = arith.constant 0 : index
    %20 = vector.load %arg1[%c1, %c0_10, %c0_11] : memref<2x88x128xbf16, #tpu.memory_space<vmem>>, vector<1x82x128xbf16>
    %21 = vector.shape_cast %20 : vector<1x82x128xbf16> to vector<82x128xbf16>
    %cst_12 = arith.constant dense<0.000000e+00> : vector<82x256xf32>
    %22 = tpu.matmul %21, %0, %cst_12 {dimension_numbers = #tpu.dot_dimension_numbers<[1], [0], [0], [1], [0, 0, 1, 1], [], []>} : vector<82x128xbf16>, vector<128x256xbf16>, vector<82x256xf32> -> vector<82x256xf32>
    %23 = vector.extract_strided_slice %22 {offsets = [0, 0], sizes = [72, 64], strides = [1, 1]} : vector<82x256xf32> to vector<72x64xf32>
    %24 = vector.extract_strided_slice %22 {offsets = [1, 64], sizes = [72, 64], strides = [1, 1]} : vector<82x256xf32> to vector<72x64xf32>
    %25 = arith.addf %23, %24 : vector<72x64xf32>
    %26 = vector.extract_strided_slice %22 {offsets = [9, 128], sizes = [72, 64], strides = [1, 1]} : vector<82x256xf32> to vector<72x64xf32>
    %27 = arith.addf %25, %26 : vector<72x64xf32>
    %28 = vector.extract_strided_slice %22 {offsets = [10, 192], sizes = [72, 64], strides = [1, 1]} : vector<82x256xf32> to vector<72x64xf32>
    %29 = arith.addf %27, %28 : vector<72x64xf32>
    %30 = vector.broadcast %1 : vector<1x64xf32> to vector<72x64xf32>
    %31 = arith.addf %29, %30 : vector<72x64xf32>
    %cst_13 = arith.constant 0.000000e+00 : f32
    %32 = vector.broadcast %cst_13 : f32 to vector<72x64xf32>
    %33 = arith.maximumf %31, %32 : vector<72x64xf32>
    %34 = arith.truncf %33 : vector<72x64xf32> to vector<72x64xbf16>
    %c1_14 = arith.constant 1 : index
    %c0_15 = arith.constant 0 : index
    %c0_16 = arith.constant 0 : index
    %35 = vector.load %arg4[%c1_14, %c0_15, %c0_16] : memref<2x72x64xbf16, #tpu.memory_space<vmem>>, vector<1x72x64xbf16>
    %36 = vector.shape_cast %35 : vector<1x72x64xbf16> to vector<72x64xbf16>
    %37 = vector.shape_cast %34 : vector<72x64xbf16> to vector<1x72x64xbf16>
    tpu.vector_store %arg4[%c1_14, %c0_15, %c0_16], %37 {strides = array<i32>} : memref<2x72x64xbf16, #tpu.memory_space<vmem>>, vector<1x72x64xbf16>,
    return
  }
  func.func @transform_0(%arg0: i32) -> (i32, i32, i32) {
    %c0_i32 = arith.constant 0 : i32
    %c0_i32_0 = arith.constant 0 : i32
    %c0_i32_1 = arith.constant 0 : i32
    return %arg0, %c0_i32, %c0_i32_0 : i32, i32, i32
  }
  func.func @transform_1(%arg0: i32) -> (i32, i32) {
    %c0_i32 = arith.constant 0 : i32
    %c0_i32_0 = arith.constant 0 : i32
    %c0_i32_1 = arith.constant 0 : i32
    return %c0_i32, %c0_i32_0 : i32, i32
  }
  func.func @transform_2(%arg0: i32) -> (i32, i32) {
    %c0_i32 = arith.constant 0 : i32
    %c0_i32_0 = arith.constant 0 : i32
    %c0_i32_1 = arith.constant 0 : i32
    return %c0_i32, %c0_i32_0 : i32, i32
  }
  func.func @transform_3(%arg0: i32) -> (i32, i32, i32) {
    %c0_i32 = arith.constant 0 : i32
    %c0_i32_0 = arith.constant 0 : i32
    %c0_i32_1 = arith.constant 0 : i32
    return %arg0, %c0_i32, %c0_i32_0 : i32, i32, i32
  }
}

module attributes {stable_mosaic.version = 11 : i64} {
  func.func @kernel(%arg0: i32, %arg1: memref<2x32x256xbf16, #tpu.memory_space<vmem>>, %arg2: memref<256x512xbf16, #tpu.memory_space<vmem>>, %arg3: memref<1x128xf32, #tpu.memory_space<vmem>>, %arg4: memref<128x64xf32, #tpu.memory_space<vmem>>, %arg5: memref<1x64xf32, #tpu.memory_space<vmem>>, %arg6: memref<2x1x64xf32, #tpu.memory_space<vmem>>) attributes {dimension_semantics = [#tpu.dimension_semantics<parallel>], iteration_bounds = array<i64: 1>, scalar_prefetch = 0 : i64, scratch_operands = 0 : i64, tpu.core_type = #tpu.core_type<tc>, window_params = [{transform_indices = @transform_0, window_bounds = array<i64: 2, 32, 256>}, {pipeline_mode = #tpu.pipeline_mode<synchronous>, transform_indices = @transform_1, window_bounds = array<i64: 256, 512>}, {pipeline_mode = #tpu.pipeline_mode<synchronous>, transform_indices = @transform_2, window_bounds = array<i64: 1, 128>}, {pipeline_mode = #tpu.pipeline_mode<synchronous>, transform_indices = @transform_3, window_bounds = array<i64: 128, 64>}, {pipeline_mode = #tpu.pipeline_mode<synchronous>, transform_indices = @transform_4, window_bounds = array<i64: 1, 64>}, {transform_indices = @transform_5, window_bounds = array<i64: 2, 1, 64>}]} {
    %c0 = arith.constant 0 : index
    %c0_0 = arith.constant 0 : index
    %0 = vector.load %arg2[%c0, %c0_0] : memref<256x512xbf16, #tpu.memory_space<vmem>>, vector<256x512xbf16>
    %c0_1 = arith.constant 0 : index
    %c0_2 = arith.constant 0 : index
    %1 = vector.load %arg3[%c0_1, %c0_2] : memref<1x128xf32, #tpu.memory_space<vmem>>, vector<1x128xf32>
    %c0_3 = arith.constant 0 : index
    %c0_4 = arith.constant 0 : index
    %2 = vector.load %arg4[%c0_3, %c0_4] : memref<128x64xf32, #tpu.memory_space<vmem>>, vector<128x64xf32>
    %c0_5 = arith.constant 0 : index
    %c0_6 = arith.constant 0 : index
    %3 = vector.load %arg5[%c0_5, %c0_6] : memref<1x64xf32, #tpu.memory_space<vmem>>, vector<1x64xf32>
    %4 = tpu.iota {dimensions = array<i32: 0>} : vector<20x1xi32>
    %c5_i32 = arith.constant 5 : i32
    %c0_i32 = arith.constant 0 : i32
    %5 = arith.cmpi eq, %c5_i32, %c0_i32 : i32
    %c1_i32 = arith.constant 1 : i32
    %6 = arith.select %5, %c1_i32, %c5_i32 : i32
    %7 = vector.broadcast %6 : i32 to vector<20x1xi32>
    %8 = arith.remsi %4, %7 : vector<20x1xi32>
    %c0_i32_7 = arith.constant 0 : i32
    %9 = vector.broadcast %c0_i32_7 : i32 to vector<20x1xi32>
    %10 = arith.cmpi ne, %8, %9 : vector<20x1xi32>
    %c0_i32_8 = arith.constant 0 : i32
    %11 = vector.broadcast %c0_i32_8 : i32 to vector<20x1xi32>
    %12 = arith.cmpi slt, %8, %11 : vector<20x1xi32>
    %c0_i32_9 = arith.constant 0 : i32
    %13 = arith.cmpi slt, %6, %c0_i32_9 : i32
    %14 = vector.broadcast %13 : i1 to vector<20x1xi1>
    %15 = vector.broadcast %14 : vector<20x1xi1> to vector<20x1xi1>
    %16 = arith.xori %12, %15 : vector<20x1xi1>
    %17 = arith.andi %16, %10 : vector<20x1xi1>
    %18 = vector.broadcast %6 : i32 to vector<20x1xi32>
    %19 = arith.addi %8, %18 : vector<20x1xi32>
    %20 = arith.select %17, %19, %8 : vector<20x1xi1>, vector<20x1xi32>
    %c4_i32 = arith.constant 4 : i32
    %21 = vector.broadcast %c4_i32 : i32 to vector<20x1xi32>
    %22 = arith.cmpi slt, %20, %21 : vector<20x1xi32>
    %c0_10 = arith.constant 0 : index
    %c0_11 = arith.constant 0 : index
    %c0_12 = arith.constant 0 : index
    %23 = vector.load %arg1[%c0_10, %c0_11, %c0_12] : memref<2x32x256xbf16, #tpu.memory_space<vmem>>, vector<1x26x256xbf16>
    %24 = vector.shape_cast %23 : vector<1x26x256xbf16> to vector<26x256xbf16>
    %cst = arith.constant dense<0.000000e+00> : vector<26x512xf32>
    %25 = tpu.matmul %24, %0, %cst {dimension_numbers = #tpu.dot_dimension_numbers<[1], [0], [0], [1], [0, 0, 1, 1], [], []>} : vector<26x256xbf16>, vector<256x512xbf16>, vector<26x512xf32> -> vector<26x512xf32>
    %26 = vector.extract_strided_slice %25 {offsets = [0, 0], sizes = [20, 128], strides = [1, 1]} : vector<26x512xf32> to vector<20x128xf32>
    %27 = vector.extract_strided_slice %25 {offsets = [1, 128], sizes = [20, 128], strides = [1, 1]} : vector<26x512xf32> to vector<20x128xf32>
    %28 = arith.addf %26, %27 : vector<20x128xf32>
    %29 = vector.extract_strided_slice %25 {offsets = [5, 256], sizes = [20, 128], strides = [1, 1]} : vector<26x512xf32> to vector<20x128xf32>
    %30 = arith.addf %28, %29 : vector<20x128xf32>
    %31 = vector.extract_strided_slice %25 {offsets = [6, 384], sizes = [20, 128], strides = [1, 1]} : vector<26x512xf32> to vector<20x128xf32>
    %32 = arith.addf %30, %31 : vector<20x128xf32>
    %33 = vector.broadcast %1 : vector<1x128xf32> to vector<20x128xf32>
    %34 = arith.addf %32, %33 : vector<20x128xf32>
    %cst_13 = arith.constant 0.000000e+00 : f32
    %35 = vector.broadcast %cst_13 : f32 to vector<20x128xf32>
    %36 = arith.maximumf %34, %35 : vector<20x128xf32>
    %cst_14 = arith.constant 0.000000e+00 : f32
    %37 = vector.shape_cast %22 : vector<20x1xi1> to vector<20x1xi1>
    %38 = vector.broadcast %37 : vector<20x1xi1> to vector<20x128xi1>
    %39 = vector.broadcast %cst_14 : f32 to vector<20x128xf32>
    %40 = arith.select %38, %36, %39 : vector<20x128xi1>, vector<20x128xf32>
    %cst_15 = arith.constant dense<0.000000e+00> : vector<128xf32>
    %41 = vector.multi_reduction <add>, %40, %cst_15 [0] : vector<20x128xf32> to vector<128xf32>
    %42 = vector.shape_cast %41 : vector<128xf32> to vector<1x128xf32>
    %cst_16 = arith.constant 6.250000e-02 : f32
    %43 = vector.broadcast %cst_16 : f32 to vector<1x128xf32>
    %44 = arith.mulf %42, %43 : vector<1x128xf32>
    %cst_17 = arith.constant dense<0.000000e+00> : vector<1x64xf32>
    %45 = tpu.matmul %44, %2, %cst_17 {dimension_numbers = #tpu.dot_dimension_numbers<[1], [0], [0], [1], [0, 0, 1, 1], [], []>} : vector<1x128xf32>, vector<128x64xf32>, vector<1x64xf32> -> vector<1x64xf32>
    %46 = arith.addf %45, %3 : vector<1x64xf32>
    %c0_18 = arith.constant 0 : index
    %c0_19 = arith.constant 0 : index
    %c0_20 = arith.constant 0 : index
    %47 = vector.load %arg6[%c0_18, %c0_19, %c0_20] : memref<2x1x64xf32, #tpu.memory_space<vmem>>, vector<1x1x64xf32>
    %48 = vector.shape_cast %47 : vector<1x1x64xf32> to vector<1x64xf32>
    %49 = vector.shape_cast %46 : vector<1x64xf32> to vector<1x1x64xf32>
    tpu.vector_store %arg6[%c0_18, %c0_19, %c0_20], %49 {strides = array<i32>} : memref<2x1x64xf32, #tpu.memory_space<vmem>>, vector<1x1x64xf32>,
    %c1 = arith.constant 1 : index
    %c0_21 = arith.constant 0 : index
    %c0_22 = arith.constant 0 : index
    %50 = vector.load %arg1[%c1, %c0_21, %c0_22] : memref<2x32x256xbf16, #tpu.memory_space<vmem>>, vector<1x26x256xbf16>
    %51 = vector.shape_cast %50 : vector<1x26x256xbf16> to vector<26x256xbf16>
    %cst_23 = arith.constant dense<0.000000e+00> : vector<26x512xf32>
    %52 = tpu.matmul %51, %0, %cst_23 {dimension_numbers = #tpu.dot_dimension_numbers<[1], [0], [0], [1], [0, 0, 1, 1], [], []>} : vector<26x256xbf16>, vector<256x512xbf16>, vector<26x512xf32> -> vector<26x512xf32>
    %53 = vector.extract_strided_slice %52 {offsets = [0, 0], sizes = [20, 128], strides = [1, 1]} : vector<26x512xf32> to vector<20x128xf32>
    %54 = vector.extract_strided_slice %52 {offsets = [1, 128], sizes = [20, 128], strides = [1, 1]} : vector<26x512xf32> to vector<20x128xf32>
    %55 = arith.addf %53, %54 : vector<20x128xf32>
    %56 = vector.extract_strided_slice %52 {offsets = [5, 256], sizes = [20, 128], strides = [1, 1]} : vector<26x512xf32> to vector<20x128xf32>
    %57 = arith.addf %55, %56 : vector<20x128xf32>
    %58 = vector.extract_strided_slice %52 {offsets = [6, 384], sizes = [20, 128], strides = [1, 1]} : vector<26x512xf32> to vector<20x128xf32>
    %59 = arith.addf %57, %58 : vector<20x128xf32>
    %60 = vector.broadcast %1 : vector<1x128xf32> to vector<20x128xf32>
    %61 = arith.addf %59, %60 : vector<20x128xf32>
    %cst_24 = arith.constant 0.000000e+00 : f32
    %62 = vector.broadcast %cst_24 : f32 to vector<20x128xf32>
    %63 = arith.maximumf %61, %62 : vector<20x128xf32>
    %cst_25 = arith.constant 0.000000e+00 : f32
    %64 = vector.shape_cast %22 : vector<20x1xi1> to vector<20x1xi1>
    %65 = vector.broadcast %64 : vector<20x1xi1> to vector<20x128xi1>
    %66 = vector.broadcast %cst_25 : f32 to vector<20x128xf32>
    %67 = arith.select %65, %63, %66 : vector<20x128xi1>, vector<20x128xf32>
    %cst_26 = arith.constant dense<0.000000e+00> : vector<128xf32>
    %68 = vector.multi_reduction <add>, %67, %cst_26 [0] : vector<20x128xf32> to vector<128xf32>
    %69 = vector.shape_cast %68 : vector<128xf32> to vector<1x128xf32>
    %cst_27 = arith.constant 6.250000e-02 : f32
    %70 = vector.broadcast %cst_27 : f32 to vector<1x128xf32>
    %71 = arith.mulf %69, %70 : vector<1x128xf32>
    %cst_28 = arith.constant dense<0.000000e+00> : vector<1x64xf32>
    %72 = tpu.matmul %71, %2, %cst_28 {dimension_numbers = #tpu.dot_dimension_numbers<[1], [0], [0], [1], [0, 0, 1, 1], [], []>} : vector<1x128xf32>, vector<128x64xf32>, vector<1x64xf32> -> vector<1x64xf32>
    %73 = arith.addf %72, %3 : vector<1x64xf32>
    %c1_29 = arith.constant 1 : index
    %c0_30 = arith.constant 0 : index
    %c0_31 = arith.constant 0 : index
    %74 = vector.load %arg6[%c1_29, %c0_30, %c0_31] : memref<2x1x64xf32, #tpu.memory_space<vmem>>, vector<1x1x64xf32>
    %75 = vector.shape_cast %74 : vector<1x1x64xf32> to vector<1x64xf32>
    %76 = vector.shape_cast %73 : vector<1x64xf32> to vector<1x1x64xf32>
    tpu.vector_store %arg6[%c1_29, %c0_30, %c0_31], %76 {strides = array<i32>} : memref<2x1x64xf32, #tpu.memory_space<vmem>>, vector<1x1x64xf32>,
    return
  }
  func.func @transform_0(%arg0: i32) -> (i32, i32, i32) {
    %c0_i32 = arith.constant 0 : i32
    %c0_i32_0 = arith.constant 0 : i32
    %c0_i32_1 = arith.constant 0 : i32
    return %arg0, %c0_i32, %c0_i32_0 : i32, i32, i32
  }
  func.func @transform_1(%arg0: i32) -> (i32, i32) {
    %c0_i32 = arith.constant 0 : i32
    %c0_i32_0 = arith.constant 0 : i32
    %c0_i32_1 = arith.constant 0 : i32
    return %c0_i32, %c0_i32_0 : i32, i32
  }
  func.func @transform_2(%arg0: i32) -> (i32, i32) {
    %c0_i32 = arith.constant 0 : i32
    %c0_i32_0 = arith.constant 0 : i32
    %c0_i32_1 = arith.constant 0 : i32
    return %c0_i32, %c0_i32_0 : i32, i32
  }
  func.func @transform_3(%arg0: i32) -> (i32, i32) {
    %c0_i32 = arith.constant 0 : i32
    %c0_i32_0 = arith.constant 0 : i32
    %c0_i32_1 = arith.constant 0 : i32
    return %c0_i32, %c0_i32_0 : i32, i32
  }
  func.func @transform_4(%arg0: i32) -> (i32, i32) {
    %c0_i32 = arith.constant 0 : i32
    %c0_i32_0 = arith.constant 0 : i32
    %c0_i32_1 = arith.constant 0 : i32
    return %c0_i32, %c0_i32_0 : i32, i32
  }
  func.func @transform_5(%arg0: i32) -> (i32, i32, i32) {
    %c0_i32 = arith.constant 0 : i32
    %c0_i32_0 = arith.constant 0 : i32
    %c0_i32_1 = arith.constant 0 : i32
    return %arg0, %c0_i32, %c0_i32_0 : i32, i32, i32
  }
}

</mosaic_0001>

<bundles_post_ra>
// kernel: simple_motion_predictor.3
= control target key start
LH: loop header
LB: loop body
LE: loop exit
PB: predicated region body
PF: predicated region fallthrough
CT: control target
= control target key end

     0   :  { %vm105_vm0 = vcmask 883712   ;;  %vm118_vm1 = vcmask 1045504   ;;  %s696_s1 = inlined_call_operand.vmem [shape: bf16[108,128], index: 1, kind: input, shape index: {}]   ;;  %s697_s0 = inlined_call_operand.vmem [shape: bf16[2,64,108], index: 0, kind: input, shape index: {}]   ;;  %s698_s2 = inlined_call_operand.vmem [shape: f32[1,128], index: 2, kind: input, shape index: {}]   ;;  %s699_s3 = inlined_call_operand.vmem [shape: bf16[2,64,128], index: 3, kind: output, shape index: {}]  }
   0x1   :  { %v581_v0 = vld [vmem:[%s696_s1] sm:$0xff]   ;;  %v582_v1 = vld [vmem:[%s696_s1 + $0x8] sm:$0xff]   ;;  %v583_v2 = vld [vmem:[%s696_s1 + $0x10] sm:$0xff]  }
   0x2   :  { %535 = vmatprep.subr.bf16.mxu0 %v581_v0  ;;  %557 = vmatprep.subr.bf16.mxu1 %v581_v0  ;;  %v584_v3 = vld [vmem:[%s696_s1 + $0x18] sm:$0xff]   ;;  %v588_v4 = vld [vmem:[%s697_s0] sm:$0xff]   ;;  %v586_v7 = vld [vmem:[%s696_s1 + $0x28] sm:$0xff]  }
   0x3   :  { %536 = vmatpush3.bf16.msra.mxu0 %v581_v0  ;;  %558 = vmatpush3.bf16.msra.mxu1 %v581_v0  ;;  %v589_v5 = vld [vmem:[%s697_s0 + $0x20] sm:$0xff]   ;;  %v587_v8 = vld [vmem:[%s696_s1 + $0x30] sm:$0x3f]   ;;  %v590_v10 = vld [vmem:[%s697_s0 + $0x8] sm:$0xff]  }
   0x4   :  { %537 = vmatprep.subr.bf16.mxu0 %v582_v1  ;;  %559 = vmatprep.subr.bf16.mxu1 %v582_v1  ;;  %v585_v6 = vld [vmem:[%s696_s1 + $0x20] sm:$0xff]   ;;  %v120_v9 = vsel %vm118_vm1, %v587_v8, 0  ;;  %v591_v11 = vld [vmem:[%s697_s0 + $0x28] sm:$0xff]   ;;  %v592_v12 = vld [vmem:[%s697_s0 + $0x10] sm:$0xff]  }
   0x5   :  { %549 = vmatprep.mubr.msk.bf16.mxu0 %vm105_vm0, %v588_v4  ;;  %571 = vmatprep.mubr.msk.bf16.mxu1 %vm105_vm0, %v589_v5  ;;  %v593_v13 = vld [vmem:[%s697_s0 + $0x30] sm:$0xff]   ;;  %v594_v14 = vld [vmem:[%s697_s0 + $0x18] sm:$0xff]   ;;  %v394_v16 = vld [vmem:[%s698_s2] ss:$0 sm:$0xff] }
   0x6   :  { %v595_v15 = vld [vmem:[%s697_s0 + $0x38] sm:$0xff]  }
   0x7   :  { %538 = vmatpush3.bf16.msra.mxu0 %v582_v1  ;;  %560 = vmatpush3.bf16.msra.mxu1 %v582_v1 }
   0x8   :  { %539 = vmatprep.subr.bf16.mxu0 %v583_v2  ;;  %561 = vmatprep.subr.bf16.mxu1 %v583_v2 }
   0xb   :  { %540 = vmatpush3.bf16.msra.mxu0 %v583_v2  ;;  %562 = vmatpush3.bf16.msra.mxu1 %v583_v2 }
   0xc   :  { %541 = vmatprep.subr.bf16.mxu0 %v584_v3  ;;  %563 = vmatprep.subr.bf16.mxu1 %v584_v3 }
   0xf   :  { %542 = vmatpush3.bf16.msra.mxu0 %v584_v3  ;;  %564 = vmatpush3.bf16.msra.mxu1 %v584_v3 }
  0x10   :  { %543 = vmatprep.subr.bf16.mxu0 %v585_v6  ;;  %565 = vmatprep.subr.bf16.mxu1 %v585_v6 }
  0x13   :  { %544 = vmatpush3.bf16.msra.mxu0 %v585_v6  ;;  %566 = vmatpush3.bf16.msra.mxu1 %v585_v6 }
  0x14   :  { %545 = vmatprep.subr.bf16.mxu0 %v586_v7  ;;  %567 = vmatprep.subr.bf16.mxu1 %v586_v7 }
  0x17   :  { %546 = vmatpush3.bf16.msra.mxu0 %v586_v7  ;;  %568 = vmatpush3.bf16.msra.mxu1 %v586_v7 }
  0x18   :  { %579 = vmatprep.subr.msk.bf16.mxu0 %vm118_vm1, %v587_v8  ;;  %580 = vmatprep.subr.msk.bf16.mxu1 %vm118_vm1, %v587_v8 }
  0x1b   :  { %548 = vmatpush3.bf16.msra.mxu0 %v120_v9  ;;  %570 = vmatpush3.bf16.msra.mxu1 %v120_v9 }
  0x1e   :  { %550 = vmatmul.mubr.msk.bf16.vlgmr.msra.gmra.mrb[0].mxu0 %vm105_vm0, %v590_v10  ;;  %572 = vmatmul.mubr.msk.bf16.vlgmr.msra.gmra.mrb[0].mxu1 %vm105_vm0, %v591_v11 }
  0x1f   :  { %553 = vmatprep.mubr.msk.bf16.mxu0 %vm105_vm0, %v592_v12  ;;  %575 = vmatprep.mubr.msk.bf16.mxu1 %vm105_vm0, %v593_v13 }
  0x26   :  { %554 = vmatmul.mubr.msk.bf16.gmra.mrb[4].mxu0 %vm105_vm0, %v594_v14  ;;  %576 = vmatmul.mubr.msk.bf16.gmra.mrb[4].mxu1 %vm105_vm0, %v595_v15 }
  0xf1   :  { %v551_v17 = vpop.f32.mrb[0].mxu0  ;;  %v573_v18 = vpop.f32.mrb[0].mxu1 }
  0xf2   :  { %v165_v19 = vadd.f32 %v551_v17, %v394_v16  ;;  %v319_v20 = vadd.f32 %v573_v18, %v394_v16  ;;  %v156_v21 = vpop.f32.mrb[1].mxu0  ;;  %v310_v22 = vpop.f32.mrb[1].mxu1 }
  0xf3   :  { %v157_v23 = vadd.f32 %v394_v16, %v156_v21  ;;  %v311_v24 = vadd.f32 %v394_v16, %v310_v22  ;;  %v552_v25 = vpop.f32.mrb[2].mxu0  ;;  %v574_v26 = vpop.f32.mrb[2].mxu1 }
  0xf4   :  { %v168_v27 = vadd.f32 %v552_v25, %v394_v16  ;;  %v322_v28 = vadd.f32 %v574_v26, %v394_v16  ;;  %v159_v29 = vpop.f32.mrb[3].mxu0  ;;  %v313_v30 = vpop.f32.mrb[3].mxu1  ;;  %v189_v33 = vmax.f32 %v165_v19, 0.0  ;;  %v343_v34 = vmax.f32 %v319_v20, 0.0 }
  0xf5   :  { %v160_v31 = vadd.f32 %v394_v16, %v159_v29  ;;  %v314_v32 = vadd.f32 %v394_v16, %v313_v30  ;;  %v187_v37 = vmax.f32 %v157_v23, 0.0  ;;  %v341_v38 = vmax.f32 %v311_v24, 0.0 }
  0xf6   :  { %v190_v35 = vmax.f32 %v168_v27, 0.0  ;;  %v344_v36 = vmax.f32 %v322_v28, 0.0 }
  0xf7   :  { %v188_v39 = vmax.f32 %v160_v31, 0.0  ;;  %v342_v40 = vmax.f32 %v314_v32, 0.0 }
  0xf8   :  { %v474_v41 = vpack.c.bf16 %v190_v35, %v189_v33  ;;  %v494_v42 = vpack.c.bf16 %v344_v36, %v343_v34 }
  0xf9   :  { %v469_v43 = vpack.c.bf16 %v188_v39, %v187_v37  ;;  %v489_v44 = vpack.c.bf16 %v342_v40, %v341_v38  ;;  %v555_v45 = vpop.f32.mrb[4].mxu0  ;;  %v577_v46 = vpop.f32.mrb[4].mxu1 }
  0xfa   :  { %506 = vst [vmem:[%s699_s3 + $0x8] sm:$0xff] %v474_v41   ;;  %510 = vst [vmem:[%s699_s3 + $0x28] sm:$0xff] %v494_v42   ;;  %v181_v47 = vadd.f32 %v555_v45, %v394_v16  ;;  %v335_v48 = vadd.f32 %v577_v46, %v394_v16  ;;  %v172_v49 = vpop.f32.mrb[5].mxu0  ;;  %v326_v50 = vpop.f32.mrb[5].mxu1 }
  0xfb   :  { %470 = vst [vmem:[%s699_s3] sm:$0xff] %v469_v43   ;;  %509 = vst [vmem:[%s699_s3 + $0x20] sm:$0xff] %v489_v44   ;;  %v173_v51 = vadd.f32 %v394_v16, %v172_v49  ;;  %v327_v52 = vadd.f32 %v394_v16, %v326_v50  ;;  %v556_v53 = vpop.f32.mrb[6].mxu0  ;;  %v578_v54 = vpop.f32.mrb[6].mxu1 }
  0xfc   :  { %v184_v55 = vadd.f32 %v556_v53, %v394_v16  ;;  %v338_v56 = vadd.f32 %v578_v54, %v394_v16  ;;  %v175_v57 = vpop.f32.mrb[7].mxu0  ;;  %v329_v58 = vpop.f32.mrb[7].mxu1  ;;  %v193_v61 = vmax.f32 %v181_v47, 0.0  ;;  %v347_v62 = vmax.f32 %v335_v48, 0.0 }
  0xfd   :  { %v176_v59 = vadd.f32 %v394_v16, %v175_v57  ;;  %v330_v60 = vadd.f32 %v394_v16, %v329_v58  ;;  %v191_v1 = vmax.f32 %v173_v51, 0.0  ;;  %v345_v2 = vmax.f32 %v327_v52, 0.0 }
  0xfe   :  { %v194_v63 = vmax.f32 %v184_v55, 0.0  ;;  %v348_v0 = vmax.f32 %v338_v56, 0.0 }
  0xff   :  { %v192_v3 = vmax.f32 %v176_v59, 0.0  ;;  %v346_v4 = vmax.f32 %v330_v60, 0.0 }
 0x100   :  { %v484_v5 = vpack.c.bf16 %v194_v63, %v193_v61  ;;  %v504_v6 = vpack.c.bf16 %v348_v0, %v347_v62 }
 0x101   :  { %v479_v7 = vpack.c.bf16 %v192_v3, %v191_v1  ;;  %v499_v8 = vpack.c.bf16 %v346_v4, %v345_v2 }
 0x102   :  { %508 = vst [vmem:[%s699_s3 + $0x18] sm:$0xff] %v484_v5   ;;  %512 = vst [vmem:[%s699_s3 + $0x38] sm:$0xff] %v504_v6  }
 0x103   :  { %507 = vst [vmem:[%s699_s3 + $0x10] sm:$0xff] %v479_v7   ;;  %511 = vst [vmem:[%s699_s3 + $0x30] sm:$0xff] %v499_v8  }

// kernel: simple_motion_predictor.4
= control target key start
LH: loop header
LB: loop body
LE: loop exit
PB: predicated region body
PF: predicated region fallthrough
CT: control target
= control target key end

     0   :  { %v980_v1 = vmov 0   ;;  %vm256_vm0 = vcmask 1046528   ;;  %vm359_vm1 = vcmask 1045504   ;;  %vm476_vm2 = vcmask 519168   ;;  %s1445_s1 = inlined_call_operand.vmem [shape: bf16[128,256], index: 1, kind: input, shape index: {}]   ;;  %s1446_s0 = inlined_call_operand.vmem [shape: bf16[2,88,128], index: 0, kind: input, shape index: {}]   ;;  %s1447_s2 = inlined_call_operand.vmem [shape: f32[1,64], index: 2, kind: input, shape index: {}]   ;;  %s1448_s3 = inlined_call_operand.vmem [shape: bf16[2,72,64], index: 3, kind: output, shape index: {}]  }
   0x1   :  { %v944_v0 = vld [vmem:[%s1445_s1 + $0x4] ss:$8 sps:$4 sm:$0xff]   ;;  %189 = vmatprep.mubr.bf16.mxu0 %v980_v1  ;;  %564 = vmatprep.mubr.bf16.mxu1 %v980_v1  ;;  %v946_v2 = vld [vmem:[%s1445_s1] ss:$8 sps:$4 sm:$0xff]   ;;  %v947_v3 = vld [vmem:[%s1445_s1 + $0x14] ss:$8 sps:$4 sm:$0xff]  }
   0x2   :  { %157 = vmatprep.subr.bf16.mxu0 %v944_v0  ;;  %532 = vmatprep.subr.bf16.mxu1 %v944_v0  ;;  %v949_v4 = vld [vmem:[%s1445_s1 + $0x10] ss:$8 sps:$4 sm:$0xff]   ;;  %v950_v5 = vld [vmem:[%s1445_s1 + $0x24] ss:$8 sps:$4 sm:$0xff]   ;;  %v952_v6 = vld [vmem:[%s1445_s1 + $0x20] ss:$8 sps:$4 sm:$0xff]  }
   0x3   :  { %158 = vmatpush1.bf16.msra.mxu0 %v946_v2  ;;  %533 = vmatpush1.bf16.msra.mxu1 %v946_v2  ;;  %v953_v7 = vld [vmem:[%s1445_s1 + $0x34] ss:$8 sps:$4 sm:$0xff]   ;;  %v955_v8 = vld [vmem:[%s1445_s1 + $0x30] ss:$8 sps:$4 sm:$0xff]   ;;  %v956_v9 = vld [vmem:[%s1445_s1 + $0x44] ss:$8 sps:$4 sm:$0xff]  }
   0x4   :  { %159 = vmatprep.subr.bf16.mxu0 %v947_v3  ;;  %534 = vmatprep.subr.bf16.mxu1 %v947_v3  ;;  %v958_v10 = vld [vmem:[%s1445_s1 + $0x40] ss:$8 sps:$4 sm:$0xff]   ;;  %v959_v11 = vld [vmem:[%s1445_s1 + $0x54] ss:$8 sps:$4 sm:$0xff]   ;;  %v961_v12 = vld [vmem:[%s1445_s1 + $0x50] ss:$8 sps:$4 sm:$0xff]  }
   0x5   :  { %v962_v13 = vld [vmem:[%s1445_s1 + $0x64] ss:$8 sps:$4 sm:$0xff]   ;;  %v964_v14 = vld [vmem:[%s1445_s1 + $0x60] ss:$8 sps:$4 sm:$0xff]   ;;  %v965_v15 = vld [vmem:[%s1445_s1 + $0x74] ss:$8 sps:$4 sm:$0xff]  }
   0x6   :  { %v967_v16 = vld [vmem:[%s1445_s1 + $0x70] ss:$8 sps:$4 sm:$0xff]   ;;  %v968_v17 = vld [vmem:[%s1446_s0] sm:$0xff]   ;;  %v970_v19 = vld [vmem:[%s1446_s0 + $0x8] sm:$0xff]  }
   0x7   :  { %160 = vmatpush1.bf16.msra.mxu0 %v949_v4  ;;  %535 = vmatpush1.bf16.msra.mxu1 %v949_v4  ;;  %v969_v18 = vld [vmem:[%s1446_s0 + $0x2c] sm:$0xff]   ;;  %v971_v20 = vld [vmem:[%s1446_s0 + $0x34] sm:$0xff]   ;;  %v973_v22 = vld [vmem:[%s1446_s0 + $0x3c] sm:$0xff]  }
   0x8   :  { %161 = vmatprep.subr.bf16.mxu0 %v950_v5  ;;  %536 = vmatprep.subr.bf16.mxu1 %v950_v5  ;;  %v972_v21 = vld [vmem:[%s1446_s0 + $0x10] sm:$0xff]   ;;  %v974_v23 = vld [vmem:[%s1446_s0 + $0x18] sm:$0xff]   ;;  %v975_v24 = vld [vmem:[%s1446_s0 + $0x44] sm:$0xff]  }
   0x9   :  { %v976_v25 = vld [vmem:[%s1446_s0 + $0x20] sm:$0xff]   ;;  %v977_v26 = vld [vmem:[%s1446_s0 + $0x4c] sm:$0xff]   ;;  %v978_v27 = vld [vmem:[%s1446_s0 + $0x28] ss:$0 sps:$4 sm:$0x11]  }
   0xa   :  { %v979_v28 = vld [vmem:[%s1446_s0 + $0x54] ss:$0 sps:$4 sm:$0x11]   ;;  %s981_s0 = smov 64  }
   0xb   :  { %162 = vmatpush1.bf16.msra.mxu0 %v952_v6  ;;  %537 = vmatpush1.bf16.msra.mxu1 %v952_v6 }
   0xc   :  { %163 = vmatprep.subr.bf16.mxu0 %v953_v7  ;;  %538 = vmatprep.subr.bf16.mxu1 %v953_v7 }
   0xf   :  { %164 = vmatpush1.bf16.msra.mxu0 %v955_v8  ;;  %539 = vmatpush1.bf16.msra.mxu1 %v955_v8 }
  0x10   :  { %165 = vmatprep.subr.bf16.mxu0 %v956_v9  ;;  %540 = vmatprep.subr.bf16.mxu1 %v956_v9 }
  0x13   :  { %166 = vmatpush1.bf16.msra.mxu0 %v958_v10  ;;  %541 = vmatpush1.bf16.msra.mxu1 %v958_v10 }
  0x14   :  { %167 = vmatprep.subr.bf16.mxu0 %v959_v11  ;;  %542 = vmatprep.subr.bf16.mxu1 %v959_v11 }
  0x17   :  { %168 = vmatpush1.bf16.msra.mxu0 %v961_v12  ;;  %543 = vmatpush1.bf16.msra.mxu1 %v961_v12 }
  0x18   :  { %169 = vmatprep.subr.bf16.mxu0 %v962_v13  ;;  %544 = vmatprep.subr.bf16.mxu1 %v962_v13 }
  0x1b   :  { %170 = vmatpush1.bf16.msra.mxu0 %v964_v14  ;;  %545 = vmatpush1.bf16.msra.mxu1 %v964_v14 }
  0x1c   :  { %171 = vmatprep.subr.bf16.mxu0 %v965_v15  ;;  %546 = vmatprep.subr.bf16.mxu1 %v965_v15 }
  0x1f   :  { %172 = vmatpush1.bf16.msra.mxu0 %v967_v16  ;;  %547 = vmatpush1.bf16.msra.mxu1 %v967_v16 }
  0x22   :  { %190 = vmatmul.mubr.bf16.vlgmr.msra.gmra.mrb[0].mxu0 %v968_v17  ;;  %565 = vmatmul.mubr.bf16.vlgmr.msra.gmra.mrb[0].mxu1 %v969_v18 }
  0x23   :  { %198 = vmatprep.mubr.bf16.mxu0 %v980_v1  ;;  %573 = vmatprep.mubr.bf16.mxu1 %v980_v1 }
  0x2a   :  { %199 = vmatmul.mubr.bf16.gmra.mrb[4].mxu0 %v970_v19  ;;  %574 = vmatmul.mubr.bf16.gmra.mrb[4].mxu1 %v971_v20 }
  0x2b   :  { %208 = vmatprep.mubr.bf16.mxu0 %v980_v1  ;;  %583 = vmatprep.mubr.bf16.mxu1 %v980_v1 }
  0x32   :  { %209 = vmatmul.mubr.bf16.gmra.mrb[8].mxu0 %v972_v21  ;;  %584 = vmatmul.mubr.bf16.gmra.mrb[8].mxu1 %v973_v22 }
  0x33   :  { %218 = vmatprep.mubr.bf16.mxu0 %v980_v1  ;;  %593 = vmatprep.mubr.bf16.mxu1 %v980_v1 }
  0x3a   :  { %219 = vmatmul.mubr.bf16.gmra.mrb[12].mxu0 %v974_v23  ;;  %594 = vmatmul.mubr.bf16.gmra.mrb[12].mxu1 %v975_v24 }
  0x3b   :  { %228 = vmatprep.mubr.bf16.mxu0 %v980_v1  ;;  %603 = vmatprep.mubr.bf16.mxu1 %v980_v1 }
  0x42   :  { %229 = vmatmul.mubr.bf16.gmra.mrb[16].mxu0 %v976_v25  ;;  %604 = vmatmul.mubr.bf16.gmra.mrb[16].mxu1 %v977_v26 }
  0x43   :  { %238 = vmatprep.mubr.bf16.mxu0 %v980_v1  ;;  %613 = vmatprep.mubr.bf16.mxu1 %v980_v1 }
  0x4a   :  { %239 = vmatmul.mubr.bf16.gmra.mrb[20].mxu0 %v978_v27  ;;  %614 = vmatmul.mubr.bf16.gmra.mrb[20].mxu1 %v979_v28 }
  0xf5   :  { %v1098_v29 = vpop.f32.mrb[0].mxu0  ;;  %v1100_v30 = vpop.f32.mrb[0].mxu1 }
  0xf6   :  { %v257_v31 = vrot.slane %v1098_v29, 1  ;;  %v193_v32 = vpop.f32.mrb[1].mxu0  ;;  %v568_v33 = vpop.f32.mrb[1].mxu1  ;;  %v631_v36 = vrot.slane %v1100_v30, 1 }
  0xf7   :  { %v1103_v34 = vpop.f32.mrb[2].mxu0  ;;  %v1105_v35 = vpop.f32.mrb[2].mxu1 }
  0xf8   :  { %v258_v37 = vrot.slane %v1103_v34, 1  ;;  %v632_v38 = vrot.slane %v1105_v35, 1  ;;  %v196_v39 = vpop.f32.mrb[3].mxu0  ;;  %v571_v40 = vpop.f32.mrb[3].mxu1 }
  0xf9   :  { %v322_v43 = vrot.slane %v196_v39, 1  ;;  %v360_v44 = vrot.slane %v196_v39, 2  ;;  %v696_v47 = vrot.slane %v571_v40, 1  ;;  %v733_v48 = vrot.slane %v571_v40, 2 }
  0xfa   :  { %v633_v41 = vsel %vm256_vm0, %v631_v36, %v632_v38  ;;  %v259_v42 = vsel %vm256_vm0, %v257_v31, %v258_v37 }
  0xfb   :  { %650 = vrot.lane.b32.xlu1 %v633_v41, %s981_s0  ;;  %276 = vrot.lane.b32.xlu0 %v259_v42, %s981_s0 }
  0xfd   :  { %v1114_v45 = vpop.f32.mrb[4].mxu0  ;;  %v1116_v46 = vpop.f32.mrb[4].mxu1 }
  0xfe   :  { %v260_v49 = vrot.slane %v1114_v45, 1  ;;  %v634_v50 = vrot.slane %v1116_v46, 1  ;;  %v202_v51 = vpop.f32.mrb[5].mxu0  ;;  %v577_v52 = vpop.f32.mrb[5].mxu1 }
  0xff   :  { %v323_v53 = vrot.slane %v202_v51, 1  ;;  %v361_v54 = vrot.slane %v202_v51, 2  ;;  %v697_v55 = vrot.slane %v577_v52, 1  ;;  %v734_v56 = vrot.slane %v577_v52, 2  ;;  %v1120_v57 = vpop.f32.mrb[6].mxu0  ;;  %v1122_v58 = vpop.f32.mrb[6].mxu1 }
 0x100   :  { %v262_v59 = vrot.slane %v1120_v57, 1  ;;  %v636_v60 = vrot.slane %v1122_v58, 1  ;;  %v206_v61 = vpop.f32.mrb[7].mxu0  ;;  %v581_v62 = vpop.f32.mrb[7].mxu1  ;;  %v261_v63 = vsel %vm256_vm0, %v258_v37, %v260_v49  ;;  %v635_v0 = vsel %vm256_vm0, %v632_v38, %v634_v50 }
 0x101   :  { %v325_v1 = vrot.slane %v206_v61, 1  ;;  %v363_v2 = vrot.slane %v206_v61, 2  ;;  %v699_v3 = vrot.slane %v581_v62, 1  ;;  %v736_v4 = vrot.slane %v581_v62, 2  ;;  %278 = vrot.lane.b32.xlu0 %v261_v63, %s981_s0 }
 0x102   :  { %v735_v5 = vsel %vm359_vm1, %v733_v48, %v734_v56  ;;  %v263_v6 = vsel %vm256_vm0, %v260_v49, %v262_v59  ;;  %v362_v7 = vsel %vm359_vm1, %v360_v44, %v361_v54  ;;  %v637_v8 = vsel %vm256_vm0, %v634_v50, %v636_v60 }
 0x103   :  { %752 = vrot.lane.b32.xlu1 %v735_v5, %s981_s0  ;;  %v737_v9 = vsel %vm359_vm1, %v734_v56, %v736_v4  ;;  %v364_v10 = vsel %vm359_vm1, %v361_v54, %v363_v2  ;;  %v1137_v11 = vsel %vm256_vm0, %v696_v47, %v697_v55  ;;  %v1140_v12 = vsel %vm256_vm0, %v322_v43, %v323_v53 }
 0x104   :  { %v1143_v13 = vsel %vm256_vm0, %v697_v55, %v699_v3  ;;  %v1146_v14 = vsel %vm256_vm0, %v323_v53, %v325_v1 }
 0x105   :  { %v1148_v15 = vpop.f32.mrb[8].mxu1  ;;  %652 = vrot.lane.b32.xlu0 %v635_v0, %s981_s0  ;;  %v1151_v16 = vpop.f32.mrb[8].mxu0 }
 0x106   :  { %v638_v17 = vrot.slane %v1148_v15, 1  ;;  %v264_v18 = vrot.slane %v1151_v16, 1  ;;  %v587_v19 = vpop.f32.mrb[9].mxu1  ;;  %v212_v20 = vpop.f32.mrb[9].mxu0 }
 0x107   :  { %v701_v21 = vrot.slane %v587_v19, 1  ;;  %v738_v22 = vrot.slane %v587_v19, 2  ;;  %280 = vrot.lane.b32.xlu1 %v263_v6, %s981_s0  ;;  %v327_v23 = vrot.slane %v212_v20, 1  ;;  %v365_v24 = vrot.slane %v212_v20, 2  ;;  %v1156_v25 = vpop.f32.mrb[10].mxu0  ;;  %v1158_v26 = vpop.f32.mrb[10].mxu1 }
 0x108   :  { %v266_v27 = vrot.slane %v1156_v25, 1  ;;  %v640_v28 = vrot.slane %v1158_v26, 1  ;;  %v216_v31 = vpop.f32.mrb[11].mxu0  ;;  %v591_v32 = vpop.f32.mrb[11].mxu1  ;;  %v639_v33 = vsel %vm256_vm0, %v636_v60, %v638_v17  ;;  %v265_v36 = vsel %vm256_vm0, %v262_v59, %v264_v18 }
 0x109   :  { %379 = vrot.lane.b32.xlu0 %v362_v7, %s981_s0  ;;  %v329_v37 = vrot.slane %v216_v31, 1  ;;  %v367_v38 = vrot.slane %v216_v31, 2  ;;  %v703_v39 = vrot.slane %v591_v32, 1  ;;  %v740_v40 = vrot.slane %v591_v32, 2 }
 0x10a   :  { %v366_v41 = vsel %vm359_vm1, %v363_v2, %v365_v24  ;;  %v739_v42 = vsel %vm359_vm1, %v736_v4, %v738_v22  ;;  %v1168_v43 = vsel %vm256_vm0, %v264_v18, %v266_v27  ;;  %v1171_v44 = vsel %vm256_vm0, %v638_v17, %v640_v28 }
 0x10b   :  { %654 = vrot.lane.b32.xlu1 %v637_v8, %s981_s0  ;;  %v1175_v47 = vsel %vm359_vm1, %v738_v22, %v740_v40  ;;  %v1178_v48 = vsel %vm359_vm1, %v365_v24, %v367_v38  ;;  %v1181_v49 = vsel %vm256_vm0, %v325_v1, %v327_v23  ;;  %v1184_v50 = vsel %vm256_vm0, %v699_v3, %v701_v21 }
 0x10c   :  { %v1187_v51 = vsel %vm256_vm0, %v701_v21, %v703_v39  ;;  %v1190_v52 = vsel %vm256_vm0, %v327_v23, %v329_v37 }
 0x10d   :  { %v1192_v53 = vpop.f32.mrb[12].mxu1  ;;  %754 = vrot.lane.b32.xlu0 %v737_v9, %s981_s0  ;;  %v1195_v54 = vpop.f32.mrb[12].mxu0 }
 0x10e   :  { %v642_v55 = vrot.slane %v1192_v53, 1  ;;  %v268_v56 = vrot.slane %v1195_v54, 1  ;;  %v597_v59 = vpop.f32.mrb[13].mxu1  ;;  %v222_v60 = vpop.f32.mrb[13].mxu0 }
 0x10f   :  { %v705_v61 = vrot.slane %v597_v59, 1  ;;  %v742_v62 = vrot.slane %v597_v59, 2  ;;  %381 = vrot.lane.b32.xlu1 %v364_v10, %s981_s0  ;;  %v331_v63 = vrot.slane %v222_v60, 1  ;;  %v369_v0 = vrot.slane %v222_v60, 2  ;;  %v1200_v1 = vpop.f32.mrb[14].mxu0  ;;  %v1202_v2 = vpop.f32.mrb[14].mxu1 }
 0x110   :  { %1453 = vst [vmem:[#allocation2_spill] sm:$0xff] %v1200_v1  ;;  %1454 = vst [vmem:[#allocation3_spill] sm:$0xff] %v1202_v2  ;;  %v270_v3 = vrot.slane %v1200_v1, 1  ;;  %v644_v4 = vrot.slane %v1202_v2, 1  ;;  %v226_v5 = vpop.f32.mrb[15].mxu0  ;;  %v601_v6 = vpop.f32.mrb[15].mxu1  ;;  %v1207_v7 = vsel %vm256_vm0, %v640_v28, %v642_v55  ;;  %v1210_v8 = vsel %vm256_vm0, %v266_v27, %v268_v56 }
 0x111   :  { %656 = vrot.lane.b32.xlu0 %v639_v33, %s981_s0  ;;  %v333_v9 = vrot.slane %v226_v5, 1  ;;  %v371_v10 = vrot.slane %v226_v5, 2  ;;  %v707_v17 = vrot.slane %v601_v6, 1  ;;  %v744_v18 = vrot.slane %v601_v6, 2 }
 0x112   :  { %v1214_v19 = vsel %vm359_vm1, %v367_v38, %v369_v0  ;;  %v1217_v20 = vsel %vm359_vm1, %v740_v40, %v742_v62  ;;  %v1220_v21 = vsel %vm256_vm0, %v268_v56, %v270_v3  ;;  %v1223_v22 = vsel %vm256_vm0, %v642_v55, %v644_v4 }
 0x113   :  { %282 = vrot.lane.b32.xlu1 %v265_v36, %s981_s0  ;;  %v1227_v23 = vsel %vm359_vm1, %v742_v62, %v744_v18  ;;  %v1230_v24 = vsel %vm359_vm1, %v369_v0, %v371_v10  ;;  %v1233_v27 = vsel %vm256_vm0, %v329_v37, %v331_v63  ;;  %v1236_v28 = vsel %vm256_vm0, %v703_v39, %v705_v61 }
 0x114   :  { %v1239_v31 = vsel %vm256_vm0, %v705_v61, %v707_v17  ;;  %v1242_v32 = vsel %vm256_vm0, %v331_v63, %v333_v9 }
 0x115   :  { %383 = vrot.lane.b32.xlu0 %v366_v41, %s981_s0  ;;  %v1245_v33 = vpop.f32.mrb[16].mxu1  ;;  %v1247_v36 = vpop.f32.mrb[16].mxu0 }
 0x116   :  { %1455 = vst [vmem:[#allocation4_spill] sm:$0xff] %v1245_v33  ;;  %1456 = vst [vmem:[#allocation5_spill] sm:$0xff] %v1247_v36  ;;  %v646_v38 = vrot.slane %v1245_v33, 1  ;;  %v272_v37 = vrot.slane %v1247_v36, 1  ;;  %v607_v40 = vpop.f32.mrb[17].mxu1  ;;  %v232_v55 = vpop.f32.mrb[17].mxu0 }
 0x117   :  { %756 = vrot.lane.b32.xlu1 %v739_v42, %s981_s0  ;;  %v709_v39 = vrot.slane %v607_v40, 1  ;;  %v746_v56 = vrot.slane %v607_v40, 2  ;;  %v335_v59 = vrot.slane %v232_v55, 1  ;;  %v373_v60 = vrot.slane %v232_v55, 2  ;;  %v234_v61 = vpop.f32.mrb[18].mxu0  ;;  %v609_v62 = vpop.f32.mrb[18].mxu1 }
 0x118   :  { %v274_v63 = vrot.slane %v234_v61, 1  ;;  %v648_v41 = vrot.slane %v609_v62, 1  ;;  %v236_v0 = vpop.f32.mrb[19].mxu0  ;;  %v611_v5 = vpop.f32.mrb[19].mxu1  ;;  %v647_v6 = vsel %vm256_vm0, %v644_v4, %v646_v38  ;;  %v273_v33 = vsel %vm256_vm0, %v270_v3, %v272_v37 }
 0x119   :  { %284 = vrot.lane.b32.xlu0 %v1168_v43, %s981_s0  ;;  %v337_v36 = vrot.slane %v236_v0, 1  ;;  %v375_v1 = vrot.slane %v236_v0, 2  ;;  %v711_v42 = vrot.slane %v611_v5, 1  ;;  %v748_v2 = vrot.slane %v611_v5, 2 }
 0x11a   :  { %v374_v40 = vsel %vm359_vm1, %v371_v10, %v373_v60  ;;  %v747_v55 = vsel %vm359_vm1, %v744_v18, %v746_v56  ;;  %v275_v61 = vsel %vm256_vm0, %v272_v37, %v274_v63  ;;  %v649_v62 = vsel %vm256_vm0, %v646_v38, %v648_v41 }
 0x11b   :  { %658 = vrot.lane.b32.xlu1 %v1171_v44, %s981_s0  ;;  %v376_v3 = vsel %vm359_vm1, %v373_v60, %v375_v1  ;;  %v749_v4 = vsel %vm359_vm1, %v746_v56, %v748_v2  ;;  %v1265_v43 = vsel %vm256_vm0, %v333_v9, %v335_v59  ;;  %v1268_v0 = vsel %vm256_vm0, %v707_v17, %v709_v39 }
 0x11c   :  { %v1271_v10 = vsel %vm256_vm0, %v335_v59, %v337_v36  ;;  %v1274_v18 = vsel %vm256_vm0, %v709_v39, %v711_v42 }
 0x11d   :  { %1457 = vst [vmem:[#allocation6_spill] sm:$0xff] %v1271_v10  ;;  %758 = vrot.lane.b32.xlu0 %v1175_v47, %s981_s0  ;;  %v615_v44 = vpop.f32.mrb[20].mxu1  ;;  %v240_v38 = vpop.f32.mrb[20].mxu0 }
 0x11e   :  { %v616_v37 = vpop.f32.mrb[21].mxu1  ;;  %v241_v60 = vpop.f32.mrb[21].mxu0 }
 0x11f   :  { %385 = vrot.lane.b32.xlu1 %v1178_v48, %s981_s0  ;;  %v713_v9 = vrot.slane %v616_v37, 1  ;;  %v750_v56 = vrot.slane %v616_v37, 2  ;;  %v339_v17 = vrot.slane %v241_v60, 1  ;;  %v377_v63 = vrot.slane %v241_v60, 2  ;;  %v243_v41 = vpop.f32.mrb[22].mxu0  ;;  %v618_v59 = vpop.f32.mrb[22].mxu1 }
 0x120   :  { %v244_v5 = vpop.f32.mrb[23].mxu0  ;;  %v619_v10 = vpop.f32.mrb[23].mxu1 }
 0x121   :  { %660 = vrot.lane.b32.xlu0 %v1207_v7, %s981_s0  ;;  %v378_v47 = vsel %vm359_vm1, %v375_v1, %v377_v63  ;;  %v751_v39 = vsel %vm359_vm1, %v748_v2, %v750_v56  ;;  %v1285_v44 = vsel %vm256_vm0, %v337_v36, %v339_v17  ;;  %v1288_v48 = vsel %vm256_vm0, %v711_v42, %v713_v9 }
 0x123   :  { %286 = vrot.lane.b32.xlu1 %v1210_v8, %s981_s0 }
 0x125   :  { %387 = vrot.lane.b32.xlu0 %v1214_v19, %s981_s0 }
 0x127   :  { %760 = vrot.lane.b32.xlu1 %v1217_v20, %s981_s0 }
 0x129   :  { %288 = vrot.lane.b32.xlu0 %v1220_v21, %s981_s0 }
 0x12b   :  { %662 = vrot.lane.b32.xlu1 %v1223_v22, %s981_s0 }
 0x12d   :  { %762 = vrot.lane.b32.xlu0 %v1227_v23, %s981_s0  ;;  %v1322_v23 = vld [vmem:[%s1447_s2] ss:$0 sm:$0xff] }
 0x12f   :  { %389 = vrot.lane.b32.xlu1 %v1230_v24, %s981_s0 }
 0x131   :  { %664 = vrot.lane.b32.xlu0 %v647_v6, %s981_s0 }
 0x133   :  { %290 = vrot.lane.b32.xlu1 %v273_v33, %s981_s0 }
 0x135   :  { %391 = vrot.lane.b32.xlu0 %v374_v40, %s981_s0 }
 0x137   :  { %764 = vrot.lane.b32.xlu1 %v747_v55, %s981_s0 }
 0x139   :  { %292 = vrot.lane.b32.xlu0 %v275_v61, %s981_s0 }
 0x13b   :  { %666 = vrot.lane.b32.xlu1 %v649_v62, %s981_s0 }
 0x13d   :  { %395 = vrot.lane.b32.xlu0 %v378_v47, %s981_s0 }
 0x13f   :  { %393 = vrot.lane.b32.xlu1 %v376_v3, %s981_s0 }
 0x141   :  { %766 = vrot.lane.b32.xlu0 %v749_v4, %s981_s0 }
 0x143   :  { %768 = vrot.lane.b32.xlu1 %v751_v39, %s981_s0 }
 0x16d   :  { %v651_v1 = vpop.permute.xlu1 %650  ;;  %v277_v2 = vpop.permute.xlu0 %276 }
 0x16e   :  { %v677_v7 = vadd.f32 %v651_v1, %v1100_v30  ;;  %v303_v8 = vadd.f32 %v277_v2, %v1098_v29 }
 0x170   :  { %v724_v19 = vadd.f32 %v1137_v11, %v677_v7  ;;  %v350_v20 = vadd.f32 %v1140_v12, %v303_v8 }
 0x173   :  { %v279_v21 = vpop.permute.xlu0 %278 }
 0x174   :  { %v304_v22 = vadd.f32 %v279_v21, %v1103_v34 }
 0x175   :  { %v753_v24 = vpop.permute.xlu1 %752 }
 0x176   :  { %v779_v33 = vadd.f32 %v753_v24, %v724_v19  ;;  %v351_v36 = vadd.f32 %v1146_v14, %v304_v22 }
 0x177   :  { %v653_v6 = vpop.permute.xlu0 %652 }
 0x178   :  { %v788_v30 = vadd.f32 %v1322_v23, %v779_v33  ;;  %v678_v29 = vadd.f32 %v653_v6, %v1105_v35 }
 0x179   :  { %v281_v11 = vpop.permute.xlu1 %280 }
 0x17a   :  { %v797_v42 = vmax.f32 %v788_v30, 0.0  ;;  %v305_v12 = vadd.f32 %v281_v11, %v1114_v45  ;;  %v725_v34 = vadd.f32 %v1143_v13, %v678_v29 }
 0x17b   :  { %v380_v40 = vpop.permute.xlu0 %379 }
 0x17c   :  { %v933_v55 = vpack.c.bf16 %v797_v42, %v797_v42  ;;  %v406_v61 = vadd.f32 %v380_v40, %v350_v20  ;;  %v352_v62 = vadd.f32 %v1181_v49, %v305_v12 }
 0x17d   :  { %v655_v3 = vpop.permute.xlu1 %654 }
 0x17e   :  { %915 = vst.msk [vmem:[%s1448_s3 + $0x24] sm:$0xf] %vm476_vm2, %v933_v55  ;;  %v421_v35 = vadd.f32 %v1322_v23, %v406_v61  ;;  %v679_v14 = vadd.f32 %v655_v3, %v1116_v46 }
 0x17f   :  { %v755_v4 = vpop.permute.xlu0 %754 }
 0x180   :  { %v430_v45 = vmax.f32 %v421_v35, 0.0  ;;  %v780_v10 = vadd.f32 %v755_v4, %v725_v34  ;;  %v726_v13 = vadd.f32 %v1184_v50, %v679_v14 }
 0x181   :  { %v382_v38 = vpop.permute.xlu1 %381 }
 0x182   :  { %v924_v37 = vpack.c.bf16 %v430_v45, %v430_v45  ;;  %v789_v60 = vadd.f32 %v1322_v23, %v780_v10  ;;  %v407_v49 = vadd.f32 %v382_v38, %v351_v36 }
 0x183   :  { %v657_v9 = vpop.permute.xlu0 %656 }
 0x184   :  { %477 = vst.msk [vmem:[%s1448_s3] sm:$0xf] %vm476_vm2, %v924_v37  ;;  %v798_v56 = vmax.f32 %v789_v60, 0.0  ;;  %v422_v17 = vadd.f32 %v1322_v23, %v407_v49  ;;  %v680_v46 = vadd.f32 %v657_v9, %v1122_v58 }
 0x185   :  { %v283_v63 = vpop.permute.xlu1 %282 }
 0x186   :  { %v934_v41 = vpack.c.bf16 %v798_v56, %v798_v56  ;;  %v431_v59 = vmax.f32 %v422_v17, 0.0  ;;  %v306_v50 = vadd.f32 %v283_v63, %v1120_v57  ;;  %v727_v5 = vadd.f32 %v1187_v51, %v680_v46 }
 0x187   :  { %v384_v47 = vpop.permute.xlu0 %383 }
 0x188   :  { %916 = vst.msk [vmem:[%s1448_s3 + $0x28] sm:$0xf] %vm476_vm2, %v934_v41  ;;  %v925_v39 = vpack.c.bf16 %v431_v59, %v431_v59  ;;  %v408_v1 = vadd.f32 %v384_v47, %v352_v62  ;;  %v353_v2 = vadd.f32 %v1190_v52, %v306_v50 }
 0x189   :  { %v757_v7 = vpop.permute.xlu1 %756 }
 0x18a   :  { %478 = vst.msk [vmem:[%s1448_s3 + $0x4] sm:$0xf] %vm476_vm2, %v925_v39  ;;  %v423_v57 = vadd.f32 %v1322_v23, %v408_v1  ;;  %v781_v58 = vadd.f32 %v757_v7, %v726_v13  ;;  %v1459_v7 = vld [vmem:[#allocation2_spill] sm:$0xff] }
 0x18b   :  { %v285_v51 = vpop.permute.xlu0 %284 }
 0x18c   :  { %v432_v8 = vmax.f32 %v423_v57, 0.0  ;;  %v790_v19 = vadd.f32 %v1322_v23, %v781_v58  ;;  %v307_v20 = vadd.f32 %v285_v51, %v1151_v16 }
 0x18d   :  { %v659_v21 = vpop.permute.xlu1 %658 }
 0x18e   :  { %v926_v22 = vpack.c.bf16 %v432_v8, %v432_v8  ;;  %v799_v24 = vmax.f32 %v790_v19, 0.0  ;;  %v681_v52 = vadd.f32 %v659_v21, %v1148_v15  ;;  %v354_v33 = vadd.f32 %v1233_v27, %v307_v20  ;;  %v1460_v19 = vld [vmem:[#allocation6_spill] sm:$0xff] }
 0x18f   :  { %v759_v36 = vpop.permute.xlu0 %758 }
 0x190   :  { %479 = vst.msk [vmem:[%s1448_s3 + $0x8] sm:$0xf] %vm476_vm2, %v926_v22  ;;  %v935_v6 = vpack.c.bf16 %v799_v24, %v799_v24  ;;  %v782_v30 = vadd.f32 %v759_v36, %v727_v5  ;;  %v728_v29 = vadd.f32 %v1236_v28, %v681_v52  ;;  %v1458_v5 = vld [vmem:[#allocation3_spill] sm:$0xff]  ;;  %v1461_v36 = vld [vmem:[#allocation5_spill] sm:$0xff] }
 0x191   :  { %v386_v11 = vpop.permute.xlu1 %385 }
 0x192   :  { %917 = vst.msk [vmem:[%s1448_s3 + $0x2c] sm:$0xf] %vm476_vm2, %v935_v6  ;;  %v791_v15 = vadd.f32 %v1322_v23, %v782_v30  ;;  %v409_v16 = vadd.f32 %v386_v11, %v353_v2 }
 0x193   :  { %v661_v27 = vpop.permute.xlu0 %660 }
 0x194   :  { %v800_v42 = vmax.f32 %v791_v15, 0.0  ;;  %v424_v12 = vadd.f32 %v1322_v23, %v409_v16  ;;  %v682_v34 = vadd.f32 %v661_v27, %v1158_v26  ;;  %v1462_v15 = vld [vmem:[#allocation4_spill] sm:$0xff] }
 0x195   :  { %v287_v40 = vpop.permute.xlu1 %286 }
 0x196   :  { %v936_v55 = vpack.c.bf16 %v800_v42, %v800_v42  ;;  %v433_v61 = vmax.f32 %v424_v12, 0.0  ;;  %v308_v28 = vadd.f32 %v287_v40, %v1156_v25  ;;  %v729_v62 = vadd.f32 %v1239_v31, %v682_v34 }
 0x197   :  { %v388_v3 = vpop.permute.xlu0 %387 }
 0x198   :  { %918 = vst.msk [vmem:[%s1448_s3 + $0x30] sm:$0xf] %vm476_vm2, %v936_v55  ;;  %v927_v35 = vpack.c.bf16 %v433_v61, %v433_v61  ;;  %v410_v14 = vadd.f32 %v388_v3, %v354_v33  ;;  %v355_v4 = vadd.f32 %v1242_v32, %v308_v28 }
 0x199   :  { %v761_v45 = vpop.permute.xlu1 %760 }
 0x19a   :  { %480 = vst.msk [vmem:[%s1448_s3 + $0xc] sm:$0xf] %vm476_vm2, %v927_v35  ;;  %v425_v25 = vadd.f32 %v1322_v23, %v410_v14  ;;  %v783_v26 = vadd.f32 %v761_v45, %v728_v29 }
 0x19b   :  { %v289_v31 = vpop.permute.xlu0 %288 }
 0x19c   :  { %v434_v10 = vmax.f32 %v425_v25, 0.0  ;;  %v792_v13 = vadd.f32 %v1322_v23, %v783_v26  ;;  %v309_v38 = vadd.f32 %v289_v31, %v1195_v54 }
 0x19d   :  { %v663_v37 = vpop.permute.xlu1 %662 }
 0x19e   :  { %v928_v60 = vpack.c.bf16 %v434_v10, %v434_v10  ;;  %v801_v49 = vmax.f32 %v792_v13, 0.0  ;;  %v683_v32 = vadd.f32 %v663_v37, %v1192_v53  ;;  %v356_v9 = vadd.f32 %v1265_v43, %v309_v38 }
 0x19f   :  { %v763_v56 = vpop.permute.xlu0 %762 }
 0x1a0   :  { %481 = vst.msk [vmem:[%s1448_s3 + $0x10] sm:$0xf] %vm476_vm2, %v928_v60  ;;  %v937_v17 = vpack.c.bf16 %v801_v49, %v801_v49  ;;  %v784_v46 = vadd.f32 %v763_v56, %v729_v62  ;;  %v730_v63 = vadd.f32 %v1268_v0, %v683_v32 }
 0x1a1   :  { %v390_v41 = vpop.permute.xlu1 %389 }
 0x1a2   :  { %919 = vst.msk [vmem:[%s1448_s3 + $0x34] sm:$0xf] %vm476_vm2, %v937_v17  ;;  %v793_v53 = vadd.f32 %v1322_v23, %v784_v46  ;;  %v411_v54 = vadd.f32 %v390_v41, %v355_v4 }
 0x1a3   :  { %v665_v43 = vpop.permute.xlu0 %664 }
 0x1a4   :  { %v802_v59 = vmax.f32 %v793_v53, 0.0  ;;  %v426_v50 = vadd.f32 %v1322_v23, %v411_v54  ;;  %v684_v47 = vadd.f32 %v665_v43, %v1458_v5 }
 0x1a5   :  { %v291_v39 = vpop.permute.xlu1 %290 }
 0x1a6   :  { %v938_v1 = vpack.c.bf16 %v802_v59, %v802_v59  ;;  %v435_v2 = vmax.f32 %v426_v50, 0.0  ;;  %v310_v0 = vadd.f32 %v291_v39, %v1459_v7  ;;  %v731_v57 = vadd.f32 %v1274_v18, %v684_v47 }
 0x1a7   :  { %v392_v58 = vpop.permute.xlu0 %391 }
 0x1a8   :  { %920 = vst.msk [vmem:[%s1448_s3 + $0x38] sm:$0xf] %vm476_vm2, %v938_v1  ;;  %v929_v51 = vpack.c.bf16 %v435_v2, %v435_v2  ;;  %v412_v8 = vadd.f32 %v392_v58, %v356_v9  ;;  %v357_v20 = vadd.f32 %v1460_v19, %v310_v0 }
 0x1a9   :  { %v765_v21 = vpop.permute.xlu1 %764 }
 0x1aa   :  { %482 = vst.msk [vmem:[%s1448_s3 + $0x14] sm:$0xf] %vm476_vm2, %v929_v51  ;;  %v427_v22 = vadd.f32 %v1322_v23, %v412_v8  ;;  %v785_v24 = vadd.f32 %v765_v21, %v730_v63 }
 0x1ab   :  { %v293_v18 = vpop.permute.xlu0 %292 }
 0x1ac   :  { %v436_v52 = vmax.f32 %v427_v22, 0.0  ;;  %v794_v33 = vadd.f32 %v1322_v23, %v785_v24  ;;  %v311_v6 = vadd.f32 %v293_v18, %v1461_v36 }
 0x1ad   :  { %v667_v30 = vpop.permute.xlu1 %666 }
 0x1ae   :  { %v930_v29 = vpack.c.bf16 %v436_v52, %v436_v52  ;;  %v803_v11 = vmax.f32 %v794_v33, 0.0  ;;  %v685_v16 = vadd.f32 %v667_v30, %v1462_v15  ;;  %v358_v27 = vadd.f32 %v1285_v44, %v311_v6 }
 0x1af   :  { %v396_v42 = vpop.permute.xlu0 %395 }
 0x1b0   :  { %483 = vst.msk [vmem:[%s1448_s3 + $0x18] sm:$0xf] %vm476_vm2, %v930_v29  ;;  %v939_v12 = vpack.c.bf16 %v803_v11, %v803_v11  ;;  %v414_v34 = vadd.f32 %v396_v42, %v358_v27  ;;  %v732_v40 = vadd.f32 %v1288_v48, %v685_v16 }
 0x1b1   :  { %v394_v55 = vpop.permute.xlu1 %393 }
 0x1b2   :  { %921 = vst.msk [vmem:[%s1448_s3 + $0x3c] sm:$0xf] %vm476_vm2, %v939_v12  ;;  %v429_v61 = vadd.f32 %v1322_v23, %v414_v34  ;;  %v413_v28 = vadd.f32 %v394_v55, %v357_v20 }
 0x1b3   :  { %v767_v44 = vpop.permute.xlu0 %766 }
 0x1b4   :  { %v438_v62 = vmax.f32 %v429_v61, 0.0  ;;  %v428_v3 = vadd.f32 %v1322_v23, %v413_v28  ;;  %v786_v35 = vadd.f32 %v767_v44, %v731_v57 }
 0x1b5   :  { %v769_v14 = vpop.permute.xlu1 %768 }
 0x1b6   :  { %v932_v4 = vpack.c.bf16 %v438_v62, %v438_v62  ;;  %v437_v45 = vmax.f32 %v428_v3, 0.0  ;;  %v795_v25 = vadd.f32 %v1322_v23, %v786_v35  ;;  %v787_v48 = vadd.f32 %v769_v14, %v732_v40 }
 0x1b8   :  { %485 = vst.msk [vmem:[%s1448_s3 + $0x20] sm:$0xf] %vm476_vm2, %v932_v4  ;;  %v931_v26 = vpack.c.bf16 %v437_v45, %v437_v45  ;;  %v804_v31 = vmax.f32 %v795_v25, 0.0  ;;  %v796_v10 = vadd.f32 %v1322_v23, %v787_v48 }
 0x1ba   :  { %484 = vst.msk [vmem:[%s1448_s3 + $0x1c] sm:$0xf] %vm476_vm2, %v931_v26  ;;  %v940_v13 = vpack.c.bf16 %v804_v31, %v804_v31  ;;  %v805_v38 = vmax.f32 %v796_v10, 0.0 }
 0x1bc   :  { %922 = vst.msk [vmem:[%s1448_s3 + $0x40] sm:$0xf] %vm476_vm2, %v940_v13  ;;  %v941_v37 = vpack.c.bf16 %v805_v38, %v805_v38 }
 0x1be   :  { %923 = vst.msk [vmem:[%s1448_s3 + $0x44] sm:$0xf] %vm476_vm2, %v941_v37 }

// kernel: simple_motion_predictor.5
= control target key start
LH: loop header
LB: loop body
LE: loop exit
PB: predicated region body
PF: predicated region fallthrough
CT: control target
= control target key end

     0   :  { %s2078_s0 = inlined_call_operand.vmem [shape: bf16[2,32,256], index: 0, kind: input, shape index: {}]   ;;  %s2079_s1 = inlined_call_operand.vmem [shape: bf16[256,512], index: 1, kind: input, shape index: {}]   ;;  %s2080_s2 = inlined_call_operand.vmem [shape: f32[1,128], index: 2, kind: input, shape index: {}]   ;;  %s2081_s3 = inlined_call_operand.vmem [shape: f32[128,64], index: 3, kind: input, shape index: {}]   ;;  %s2082_s4 = inlined_call_operand.vmem [shape: f32[1,64], index: 4, kind: input, shape index: {}]   ;;  %s2083_s5 = inlined_call_operand.hbm [shape: f32[2,1,64], index: 5, kind: output, shape index: {}]  }
   0x1   :  { %v1457_v0 = vld [vmem:[%s2079_s1 + $0x4] ss:$16 sps:$4 sm:$0xff]   ;;  %v1462_v1 = vld [vmem:[%s2079_s1 + $0xc] ss:$16 sps:$4 sm:$0xff]   ;;  %v1468_v2 = vld [vmem:[%s2079_s1] ss:$16 sps:$4 sm:$0xff]  }
   0x2   :  { %502 = vmatprep.subr.bf16.mxu0 %v1457_v0  ;;  %v1473_v3 = vld [vmem:[%s2079_s1 + $0x8] ss:$16 sps:$4 sm:$0xff]   ;;  %553 = vmatprep.subr.bf16.mxu1 %v1462_v1  ;;  %v1479_v4 = vld [vmem:[%s2079_s1 + $0x24] ss:$16 sps:$4 sm:$0xff]   ;;  %v1486_v5 = vld [vmem:[%s2079_s1 + $0x2c] ss:$16 sps:$4 sm:$0xff]  }
   0x3   :  { %503 = vmatpush1.bf16.msra.mxu0 %v1468_v2  ;;  %554 = vmatpush1.bf16.msra.mxu1 %v1473_v3  ;;  %v1491_v6 = vld [vmem:[%s2079_s1 + $0x20] ss:$16 sps:$4 sm:$0xff]   ;;  %v1497_v7 = vld [vmem:[%s2079_s1 + $0x28] ss:$16 sps:$4 sm:$0xff]   ;;  %v1503_v8 = vld [vmem:[%s2079_s1 + $0x44] ss:$16 sps:$4 sm:$0xff]  }
   0x4   :  { %504 = vmatprep.subr.bf16.mxu0 %v1479_v4  ;;  %555 = vmatprep.subr.bf16.mxu1 %v1486_v5  ;;  %v1508_v9 = vld [vmem:[%s2079_s1 + $0x4c] ss:$16 sps:$4 sm:$0xff]   ;;  %v1513_v10 = vld [vmem:[%s2079_s1 + $0x40] ss:$16 sps:$4 sm:$0xff]   ;;  %v1518_v11 = vld [vmem:[%s2079_s1 + $0x48] ss:$16 sps:$4 sm:$0xff]  }
   0x5   :  { %v1525_v12 = vld [vmem:[%s2079_s1 + $0x64] ss:$16 sps:$4 sm:$0xff]   ;;  %v1532_v13 = vld [vmem:[%s2079_s1 + $0x6c] ss:$16 sps:$4 sm:$0xff]   ;;  %v1537_v14 = vld [vmem:[%s2079_s1 + $0x60] ss:$16 sps:$4 sm:$0xff]  }
   0x6   :  { %v1544_v15 = vld [vmem:[%s2079_s1 + $0x68] ss:$16 sps:$4 sm:$0xff]   ;;  %v1549_v16 = vld [vmem:[%s2079_s1 + $0x84] ss:$16 sps:$4 sm:$0xff]   ;;  %v1556_v17 = vld [vmem:[%s2079_s1 + $0x8c] ss:$16 sps:$4 sm:$0xff]  }
   0x7   :  { %505 = vmatpush1.bf16.msra.mxu0 %v1491_v6  ;;  %556 = vmatpush1.bf16.msra.mxu1 %v1497_v7  ;;  %v1561_v18 = vld [vmem:[%s2079_s1 + $0x80] ss:$16 sps:$4 sm:$0xff]   ;;  %v1566_v19 = vld [vmem:[%s2079_s1 + $0x88] ss:$16 sps:$4 sm:$0xff]   ;;  %v1573_v20 = vld [vmem:[%s2079_s1 + $0xa4] ss:$16 sps:$4 sm:$0xff]  }
   0x8   :  { %506 = vmatprep.subr.bf16.mxu0 %v1503_v8  ;;  %557 = vmatprep.subr.bf16.mxu1 %v1508_v9  ;;  %v1580_v21 = vld [vmem:[%s2079_s1 + $0xac] ss:$16 sps:$4 sm:$0xff]   ;;  %v1585_v22 = vld [vmem:[%s2079_s1 + $0xa0] ss:$16 sps:$4 sm:$0xff]   ;;  %v1592_v23 = vld [vmem:[%s2079_s1 + $0xa8] ss:$16 sps:$4 sm:$0xff]  }
   0x9   :  { %v1597_v24 = vld [vmem:[%s2079_s1 + $0xc4] ss:$16 sps:$4 sm:$0xff]   ;;  %v1604_v25 = vld [vmem:[%s2079_s1 + $0xcc] ss:$16 sps:$4 sm:$0xff]   ;;  %v1609_v26 = vld [vmem:[%s2079_s1 + $0xc0] ss:$16 sps:$4 sm:$0xff]  }
   0xa   :  { %v1614_v27 = vld [vmem:[%s2079_s1 + $0xc8] ss:$16 sps:$4 sm:$0xff]   ;;  %v1621_v28 = vld [vmem:[%s2079_s1 + $0xe4] ss:$16 sps:$4 sm:$0xff]   ;;  %v1628_v29 = vld [vmem:[%s2079_s1 + $0xec] ss:$16 sps:$4 sm:$0xff]  }
   0xb   :  { %507 = vmatpush1.bf16.msra.mxu0 %v1513_v10  ;;  %558 = vmatpush1.bf16.msra.mxu1 %v1518_v11  ;;  %v1633_v30 = vld [vmem:[%s2079_s1 + $0xe0] ss:$16 sps:$4 sm:$0xff]   ;;  %v1640_v31 = vld [vmem:[%s2079_s1 + $0xe8] ss:$16 sps:$4 sm:$0xff]   ;;  %v1645_v32 = vld [vmem:[%s2079_s1 + $0x104] ss:$16 sps:$4 sm:$0xff]  }
   0xc   :  { %508 = vmatprep.subr.bf16.mxu0 %v1525_v12  ;;  %559 = vmatprep.subr.bf16.mxu1 %v1532_v13  ;;  %v1652_v33 = vld [vmem:[%s2079_s1 + $0x10c] ss:$16 sps:$4 sm:$0xff]   ;;  %v1657_v34 = vld [vmem:[%s2079_s1 + $0x100] ss:$16 sps:$4 sm:$0xff]   ;;  %v1662_v35 = vld [vmem:[%s2079_s1 + $0x108] ss:$16 sps:$4 sm:$0xff]  }
   0xd   :  { %v1669_v36 = vld [vmem:[%s2079_s1 + $0x124] ss:$16 sps:$4 sm:$0xff]   ;;  %v1676_v37 = vld [vmem:[%s2079_s1 + $0x12c] ss:$16 sps:$4 sm:$0xff]   ;;  %v1681_v38 = vld [vmem:[%s2079_s1 + $0x120] ss:$16 sps:$4 sm:$0xff]  }
   0xe   :  { %v1688_v39 = vld [vmem:[%s2079_s1 + $0x128] ss:$16 sps:$4 sm:$0xff]   ;;  %v1693_v40 = vld [vmem:[%s2079_s1 + $0x144] ss:$16 sps:$4 sm:$0xff]   ;;  %v1700_v41 = vld [vmem:[%s2079_s1 + $0x14c] ss:$16 sps:$4 sm:$0xff]  }
   0xf   :  { %509 = vmatpush1.bf16.msra.mxu0 %v1537_v14  ;;  %560 = vmatpush1.bf16.msra.mxu1 %v1544_v15  ;;  %v1705_v42 = vld [vmem:[%s2079_s1 + $0x140] ss:$16 sps:$4 sm:$0xff]   ;;  %v1710_v43 = vld [vmem:[%s2079_s1 + $0x148] ss:$16 sps:$4 sm:$0xff]   ;;  %v1717_v44 = vld [vmem:[%s2079_s1 + $0x164] ss:$16 sps:$4 sm:$0xff]  }
  0x10   :  { %510 = vmatprep.subr.bf16.mxu0 %v1549_v16  ;;  %561 = vmatprep.subr.bf16.mxu1 %v1556_v17  ;;  %v1724_v45 = vld [vmem:[%s2079_s1 + $0x16c] ss:$16 sps:$4 sm:$0xff]   ;;  %v1729_v46 = vld [vmem:[%s2079_s1 + $0x160] ss:$16 sps:$4 sm:$0xff]   ;;  %v1734_v47 = vld [vmem:[%s2079_s1 + $0x168] ss:$16 sps:$4 sm:$0xff]  }
  0x11   :  { %v1384_v48 = vld [vmem:[%s2078_s0 + $0x4] ss:$8 sps:$4 sm:$0xff]  }
  0x12   :  { %v1744_v49 = vld [vmem:[%s2079_s1 + $0x184] ss:$16 sps:$4 sm:$0xff]   ;;  %v1751_v50 = vld [vmem:[%s2079_s1 + $0x18c] ss:$16 sps:$4 sm:$0xff]   ;;  %534 = vmatprep.mubr.bf16.mxu0 %v1384_v48  ;;  %585 = vmatprep.mubr.bf16.mxu1 %v1384_v48 }
  0x13   :  { %511 = vmatpush1.bf16.msra.mxu0 %v1561_v18  ;;  %562 = vmatpush1.bf16.msra.mxu1 %v1566_v19 }
  0x14   :  { %512 = vmatprep.subr.bf16.mxu0 %v1573_v20  ;;  %563 = vmatprep.subr.bf16.mxu1 %v1580_v21 }
  0x17   :  { %513 = vmatpush1.bf16.msra.mxu0 %v1585_v22  ;;  %564 = vmatpush1.bf16.msra.mxu1 %v1592_v23 }
  0x18   :  { %514 = vmatprep.subr.bf16.mxu0 %v1597_v24  ;;  %565 = vmatprep.subr.bf16.mxu1 %v1604_v25 }
  0x1b   :  { %515 = vmatpush1.bf16.msra.mxu0 %v1609_v26  ;;  %566 = vmatpush1.bf16.msra.mxu1 %v1614_v27 }
  0x1c   :  { %516 = vmatprep.subr.bf16.mxu0 %v1621_v28  ;;  %567 = vmatprep.subr.bf16.mxu1 %v1628_v29 }
  0x1f   :  { %517 = vmatpush1.bf16.msra.mxu0 %v1633_v30  ;;  %568 = vmatpush1.bf16.msra.mxu1 %v1640_v31 }
  0x20   :  { %518 = vmatprep.subr.bf16.mxu0 %v1645_v32  ;;  %569 = vmatprep.subr.bf16.mxu1 %v1652_v33 }
  0x23   :  { %519 = vmatpush1.bf16.msra.mxu0 %v1657_v34  ;;  %570 = vmatpush1.bf16.msra.mxu1 %v1662_v35 }
  0x24   :  { %520 = vmatprep.subr.bf16.mxu0 %v1669_v36  ;;  %571 = vmatprep.subr.bf16.mxu1 %v1676_v37 }
  0x27   :  { %521 = vmatpush1.bf16.msra.mxu0 %v1681_v38  ;;  %572 = vmatpush1.bf16.msra.mxu1 %v1688_v39 }
  0x28   :  { %522 = vmatprep.subr.bf16.mxu0 %v1693_v40  ;;  %573 = vmatprep.subr.bf16.mxu1 %v1700_v41 }
  0x2b   :  { %523 = vmatpush1.bf16.msra.mxu0 %v1705_v42  ;;  %574 = vmatpush1.bf16.msra.mxu1 %v1710_v43 }
  0x2c   :  { %524 = vmatprep.subr.bf16.mxu0 %v1717_v44  ;;  %575 = vmatprep.subr.bf16.mxu1 %v1724_v45 }
  0x2d   :  { %10 = vsyncpa [#allocation3], 0  ;;  %v1758_v51 = vld [vmem:[%s2079_s1 + $0x180] ss:$16 sps:$4 sm:$0xff]   ;;  %v1763_v52 = vld [vmem:[%s2079_s1 + $0x188] ss:$16 sps:$4 sm:$0xff]  }
  0x2e   :  { %v1364_v53 = vld [vmem:[%s2079_s1 + $0x1a4] ss:$16 sps:$4 sm:$0xff]   ;;  %v1773_v54 = vld [vmem:[%s2079_s1 + $0x1ac] ss:$16 sps:$4 sm:$0xff]   ;;  %v1368_v55 = vld [vmem:[%s2079_s1 + $0x1a0] ss:$16 sps:$4 sm:$0xff]  }
  0x2f   :  { %525 = vmatpush1.bf16.msra.mxu0 %v1729_v46  ;;  %576 = vmatpush1.bf16.msra.mxu1 %v1734_v47  ;;  %v1783_v56 = vld [vmem:[%s2079_s1 + $0x1a8] ss:$16 sps:$4 sm:$0xff]   ;;  %v1370_v57 = vld [vmem:[%s2079_s1 + $0x1c4] ss:$16 sps:$4 sm:$0xff]   ;;  %v1792_v58 = vld [vmem:[%s2079_s1 + $0x1cc] ss:$16 sps:$4 sm:$0xff]  }
  0x30   :  { %526 = vmatprep.subr.bf16.mxu0 %v1744_v49  ;;  %577 = vmatprep.subr.bf16.mxu1 %v1751_v50  ;;  %2087 = vst [vmem:[#allocation5_spill] sm:$0xff] %v1792_v58  ;;  %v1374_v59 = vld [vmem:[%s2079_s1 + $0x1c0] ss:$16 sps:$4 sm:$0xff]   ;;  %v1801_v60 = vld [vmem:[%s2079_s1 + $0x1c8] ss:$16 sps:$4 sm:$0xff]   ;;  %vm1419_vm0 = vmmov 0  }
  0x31   :  { %2088 = vst [vmem:[#allocation6_spill] sm:$0xff] %v1801_v60  ;;  %v1376_v61 = vld [vmem:[%s2079_s1 + $0x1e4] ss:$16 sps:$4 sm:$0xff]   ;;  %v1810_v62 = vld [vmem:[%s2079_s1 + $0x1ec] ss:$16 sps:$4 sm:$0xff]   ;;  %vm625_vm1 = vcmask 1042432  }
  0x32   :  { %2089 = vst [vmem:[#allocation7_spill] sm:$0xff] %v1810_v62  ;;  %v1380_v63 = vld [vmem:[%s2079_s1 + $0x1e0] ss:$16 sps:$4 sm:$0xff]   ;;  %v1819_v48 = vld [vmem:[%s2079_s1 + $0x1e8] ss:$16 sps:$4 sm:$0xff]   ;;  %vm609_vm2 = vcmask 1046528  }
  0x33   :  { %527 = vmatpush1.bf16.msra.mxu0 %v1758_v51  ;;  %578 = vmatpush1.bf16.msra.mxu1 %v1763_v52  ;;  %vm643_vm3 = vcmask 1041408  }
  0x34   :  { %528 = vmatprep.subr.bf16.mxu0 %v1364_v53  ;;  %579 = vmatprep.subr.bf16.mxu1 %v1773_v54 }
  0x37   :  { %529 = vmatpush1.bf16.msra.mxu0 %v1368_v55  ;;  %580 = vmatpush1.bf16.msra.mxu1 %v1783_v56 }
  0x38   :  { %530 = vmatprep.subr.bf16.mxu0 %v1370_v57  ;;  %581 = vmatprep.subr.bf16.mxu1 %v1792_v58  ;;  %v1382_v58 = vld [vmem:[%s2078_s0] ss:$8 sps:$4 sm:$0xff]  }
  0x3b   :  { %531 = vmatpush1.bf16.msra.mxu0 %v1374_v59  ;;  %582 = vmatpush1.bf16.msra.mxu1 %v1801_v60  ;;  %v1385_v60 = vld [vmem:[%s2078_s0 + $0x14] ss:$8 sps:$4 sm:$0x1f]  }
  0x3c   :  { %532 = vmatprep.subr.bf16.mxu0 %v1376_v61  ;;  %583 = vmatprep.subr.bf16.mxu1 %v1810_v62  ;;  %v1387_v62 = vld [vmem:[%s2078_s0 + $0x10] ss:$8 sps:$4 sm:$0x1f]  }
  0x3f   :  { %533 = vmatpush1.bf16.msra.mxu0 %v1380_v63  ;;  %584 = vmatpush1.bf16.msra.mxu1 %v1819_v48 }
  0x40   :  { %786 = vmatprep.subr.bf16.mxu1 %v1457_v0  ;;  %v86_v0 = vld [vmem:[%s2081_s3] sm:$0xff] }
  0x42   :  { %535 = vmatmul.mubr.bf16.vlgmr.msra.gmra.mrb[0].mxu0 %v1382_v58  ;;  %586 = vmatmul.mubr.bf16.vlgmr.msra.gmra.mrb[0].mxu1 %v1382_v58  ;;  %v103_v58 = vlaneseq }
  0x43   :  { %544 = vmatprep.mubr.bf16.mxu0 %v1385_v60  ;;  %595 = vmatprep.mubr.bf16.mxu1 %v1385_v60 }
  0x44   :  { %787 = vmatpush1.bf16.msra.mxu1 %v1468_v2  ;;  %v87_v2 = vld [vmem:[%s2081_s3 + $0x8] sm:$0xff] }
  0x45   :  { %788 = vmatprep.subr.bf16.mxu1 %v1479_v4  ;;  %v1227_v4 = vpack.c.bf16 %v87_v2, %v86_v0 }
  0x48   :  { %789 = vmatpush1.bf16.msra.mxu1 %v1491_v6  ;;  %v1418_v6 = vmov 0.0|0.0  }
  0x49   :  { %790 = vmatprep.subr.bf16.mxu1 %v1503_v8  ;;  %1226 = vmatprep.subr.bf16.mxu0 %v1418_v6  ;;  %v88_v8 = vld [vmem:[%s2081_s3 + $0x10] sm:$0xff] }
  0x4a   :  { %545 = vmatmul.mubr.bf16.gmra.mrb[4].mxu0 %v1387_v62  ;;  %596 = vmatmul.mubr.bf16.gmra.mrb[4].mxu1 %v1387_v62 }
  0x4b   :  { %1228 = vmatpush3.bf16.msra.mxu0 %v1227_v4 }
  0x4c   :  { %791 = vmatpush1.bf16.msra.mxu1 %v1513_v10  ;;  %1229 = vmatprep.subr.bf16.mxu0 %v1418_v6  ;;  %v89_v10 = vld [vmem:[%s2081_s3 + $0x18] sm:$0xff] }
  0x4d   :  { %792 = vmatprep.subr.bf16.mxu1 %v1525_v12  ;;  %v1230_v12 = vpack.c.bf16 %v89_v10, %v88_v8 }
  0x4f   :  { %1231 = vmatpush3.bf16.msra.mxu0 %v1230_v12 }
  0x50   :  { %793 = vmatpush1.bf16.msra.mxu1 %v1537_v14  ;;  %1232 = vmatprep.subr.bf16.mxu0 %v1418_v6  ;;  %v90_v14 = vld [vmem:[%s2081_s3 + $0x20] sm:$0xff] }
  0x51   :  { %794 = vmatprep.subr.bf16.mxu1 %v1549_v16  ;;  %v91_v16 = vld [vmem:[%s2081_s3 + $0x28] sm:$0xff] }
  0x54   :  { %795 = vmatpush1.bf16.msra.mxu1 %v1561_v18  ;;  %v1233_v18 = vpack.c.bf16 %v91_v16, %v90_v14 }
  0x55   :  { %796 = vmatprep.subr.bf16.mxu1 %v1573_v20  ;;  %v92_v20 = vld [vmem:[%s2081_s3 + $0x30] sm:$0xff] }
  0x56   :  { %1234 = vmatpush3.bf16.msra.mxu0 %v1233_v18 }
  0x57   :  { %1235 = vmatprep.subr.bf16.mxu0 %v1418_v6 }
  0x58   :  { %797 = vmatpush1.bf16.msra.mxu1 %v1585_v22  ;;  %v93_v22 = vld [vmem:[%s2081_s3 + $0x38] sm:$0xff] }
  0x59   :  { %798 = vmatprep.subr.bf16.mxu1 %v1597_v24  ;;  %v1236_v24 = vpack.c.bf16 %v93_v22, %v92_v20 }
  0x5b   :  { %1237 = vmatpush3.bf16.msra.mxu0 %v1236_v24 }
  0x5c   :  { %799 = vmatpush1.bf16.msra.mxu1 %v1609_v26  ;;  %1238 = vmatprep.subr.bf16.mxu0 %v1418_v6  ;;  %v94_v26 = vld [vmem:[%s2081_s3 + $0x40] sm:$0xff] }
  0x5d   :  { %800 = vmatprep.subr.bf16.mxu1 %v1621_v28  ;;  %v95_v28 = vld [vmem:[%s2081_s3 + $0x48] sm:$0xff] }
  0x60   :  { %801 = vmatpush1.bf16.msra.mxu1 %v1633_v30  ;;  %v1239_v30 = vpack.c.bf16 %v95_v28, %v94_v26 }
  0x61   :  { %802 = vmatprep.subr.bf16.mxu1 %v1645_v32  ;;  %v96_v32 = vld [vmem:[%s2081_s3 + $0x50] sm:$0xff] }
  0x62   :  { %1240 = vmatpush3.bf16.msra.mxu0 %v1239_v30 }
  0x63   :  { %1241 = vmatprep.subr.bf16.mxu0 %v1418_v6 }
  0x64   :  { %803 = vmatpush1.bf16.msra.mxu1 %v1657_v34  ;;  %v97_v34 = vld [vmem:[%s2081_s3 + $0x58] sm:$0xff] }
  0x65   :  { %804 = vmatprep.subr.bf16.mxu1 %v1669_v36  ;;  %v1242_v36 = vpack.c.bf16 %v97_v34, %v96_v32 }
  0x67   :  { %1243 = vmatpush3.bf16.msra.mxu0 %v1242_v36 }
  0x68   :  { %805 = vmatpush1.bf16.msra.mxu1 %v1681_v38  ;;  %v98_v38 = vld [vmem:[%s2081_s3 + $0x60] sm:$0xff]  ;;  %1244 = vmatprep.subr.bf16.mxu0 %v1418_v6 }
  0x69   :  { %806 = vmatprep.subr.bf16.mxu1 %v1693_v40  ;;  %v99_v40 = vld [vmem:[%s2081_s3 + $0x68] sm:$0xff] }
  0x6c   :  { %807 = vmatpush1.bf16.msra.mxu1 %v1705_v42  ;;  %v1245_v42 = vpack.c.bf16 %v99_v40, %v98_v38 }
  0x6d   :  { %808 = vmatprep.subr.bf16.mxu1 %v1717_v44  ;;  %v100_v44 = vld [vmem:[%s2081_s3 + $0x70] sm:$0xff] }
  0x6e   :  { %1246 = vmatpush3.bf16.msra.mxu0 %v1245_v42 }
  0x6f   :  { %1247 = vmatprep.subr.bf16.mxu0 %v1418_v6 }
  0x70   :  { %809 = vmatpush1.bf16.msra.mxu1 %v1729_v46  ;;  %v101_v46 = vld [vmem:[%s2081_s3 + $0x78] sm:$0xff] }
  0x71   :  { %810 = vmatprep.subr.bf16.mxu1 %v1744_v49  ;;  %v1420_v49 = vmov 0.0  }
  0x72   :  { %1188 = vmatprep.mubr.msk.f32.mxu0 %vm1419_vm0, %v1420_v49 }
  0x74   :  { %811 = vmatpush1.bf16.msra.mxu1 %v1758_v51  ;;  %v1248_v51 = vpack.c.bf16 %v101_v46, %v100_v44 }
  0x75   :  { %812 = vmatprep.subr.bf16.mxu1 %v1364_v53  ;;  %v1920_v53 = vld [vmem:[%s2078_s0 + $0x20] ss:$8 sps:$4 sm:$0xff]  }
  0x76   :  { %1249 = vmatpush3.bf16.msra.mxu0 %v1248_v51 }
  0x77   :  { %837 = vmatprep.subr.bf16.mxu0 %v1462_v1  ;;  %v1933_v1 = vld [vmem:[%s2078_s0 + $0x34] ss:$8 sps:$4 sm:$0x1f]  }
  0x78   :  { %813 = vmatpush1.bf16.msra.mxu1 %v1368_v55  ;;  %v1925_v55 = vld [vmem:[%s2078_s0 + $0x24] ss:$8 sps:$4 sm:$0xff]  }
  0x79   :  { %814 = vmatprep.subr.bf16.mxu1 %v1370_v57  ;;  %818 = vmatprep.mubr.bf16.mxu1 %v1925_v55  ;;  %v1940_v57 = vld [vmem:[%s2078_s0 + $0x30] ss:$8 sps:$4 sm:$0x1f]  }
  0x7c   :  { %815 = vmatpush1.bf16.msra.mxu1 %v1374_v59  ;;  %v104_v59 = vshrl.u32 %v103_v58, 7 }
  0x7d   :  { %816 = vmatprep.subr.bf16.mxu1 %v1376_v61 }
  0x7e   :  { %v106_v60 = vadd.s32 16, %v104_v59  ;;  %v105_v61 = vadd.s32 8, %v104_v59 }
  0x80   :  { %817 = vmatpush1.bf16.msra.mxu1 %v1380_v63  ;;  %v1948_v62 = vmul.u32.u64.low 3435973837, %v104_v59  ;;  %v1949_v63 = vmul.u32.u64.high 3435973837, %v104_v59, %v1948_v62  ;;  %v1951_v0 = vmul.u32.u64.low 3435973837, %v106_v60  ;;  %v1952_v2 = vmul.u32.u64.high 3435973837, %v106_v60, %v1951_v0 }
  0x81   :  { %1250 = vmatprep.subr.bf16.mxu1 %v1418_v6 }
  0x82   :  { %v113_v10 = vshrl.u32 %v1949_v63, 2 }
  0x83   :  { %819 = vmatmul.mubr.bf16.vlgmr.msra.gmra.mrb[8].mxu1 %v1920_v53 }
  0x84   :  { %1252 = vmatpush3.bf16.msra.mxu1 %v1227_v4  ;;  %828 = vmatprep.mubr.bf16.mxu1 %v1933_v1  ;;  %v1954_v4 = vmul.u32.u64.low 3435973837, %v105_v61  ;;  %v1955_v8 = vmul.u32.u64.high 3435973837, %v105_v61, %v1954_v4  ;;  %v114_v20 = vmul.u32 5, %v113_v10 }
  0x85   :  { %1253 = vmatprep.subr.bf16.mxu1 %v1418_v6 }
  0x86   :  { %v124_v14 = vshrl.u32 %v1955_v8, 2  ;;  %v115_v46 = vsub.s32 %v104_v59, %v114_v20 }
  0x88   :  { %1255 = vmatpush3.bf16.msra.mxu1 %v1230_v12  ;;  %v135_v12 = vshrl.u32 %v1952_v2, 2  ;;  %vm140_vm4 = vcmp.ne.s32.totalorder %v115_v46, 0  ;;  %vm143_vm5 = vcmp.lt.s32.totalorder %v115_v46, 0 }
  0x89   :  { %1256 = vmatprep.subr.bf16.mxu1 %v1418_v6  ;;  %vm1972_vm10 = vmand %vm143_vm5, %vm140_vm4  ;;  %vm759_vm4 = vcmask 516096  }
  0x8a   :  { %v136_v28 = vmul.u32 5, %v135_v12 }
  0x8b   :  { %829 = vmatmul.mubr.bf16.gmra.mrb[12].mxu1 %v1940_v57 }
  0x8c   :  { %1258 = vmatpush3.bf16.msra.mxu1 %v1233_v18  ;;  %1223 = vmatprep.mubr.msk.f32.mxu1 %vm1419_vm0, %v1420_v49  ;;  %v137_v58 = vsub.s32 %v106_v60, %v136_v28  ;;  %vm679_vm0 = vcmask 1043456  }
  0x8d   :  { %1259 = vmatprep.subr.bf16.mxu1 %v1418_v6 }
  0x8e   :  { %vm142_vm6 = vcmp.ne.s32.totalorder %v137_v58, 0  ;;  %vm145_vm7 = vcmp.lt.s32.totalorder %v137_v58, 0 }
  0x8f   :  { %vm148_vm11 = vmand %vm145_vm7, %vm142_vm6 }
  0x90   :  { %1261 = vmatpush3.bf16.msra.mxu1 %v1236_v24 }
  0x91   :  { %1262 = vmatprep.subr.bf16.mxu1 %v1418_v6 }
  0x94   :  { %1264 = vmatpush3.bf16.msra.mxu1 %v1239_v30 }
  0x95   :  { %1265 = vmatprep.subr.bf16.mxu1 %v1418_v6 }
  0x98   :  { %1267 = vmatpush3.bf16.msra.mxu1 %v1242_v36  ;;  %v125_v36 = vmul.u32 5, %v124_v14 }
  0x99   :  { %1268 = vmatprep.subr.bf16.mxu1 %v1418_v6 }
  0x9a   :  { %v126_v0 = vsub.s32 %v105_v61, %v125_v36 }
  0x9c   :  { %1270 = vmatpush3.bf16.msra.mxu1 %v1245_v42  ;;  %vm141_vm8 = vcmp.ne.s32.totalorder %v126_v0, 0  ;;  %vm144_vm9 = vcmp.lt.s32.totalorder %v126_v0, 0 }
  0x9d   :  { %1271 = vmatprep.subr.bf16.mxu1 %v1418_v6  ;;  %vm147_vm12 = vmand %vm144_vm9, %vm141_vm8 }
  0xa0   :  { %1273 = vmatpush3.bf16.msra.mxu1 %v1248_v51 }
 0x115   :  { %v536_v16 = vpop.f32.mrb[0].mxu0  ;;  %v587_v18 = vpop.f32.mrb[0].mxu1 }
 0x116   :  { %v626_v22 = vrot.slane %v587_v18, 5  ;;  %v538_v24 = vpop.f32.mrb[1].mxu0  ;;  %v589_v26 = vpop.f32.mrb[1].mxu1 }
 0x117   :  { %v644_v30 = vrot.slane %v589_v26, 6  ;;  %v540_v32 = vpop.f32.mrb[2].mxu0  ;;  %v591_v34 = vpop.f32.mrb[2].mxu1  ;;  %v610_v42 = vrot.slane %v538_v24, 1  ;;  %v151_v24 = vadd.s32 5, %v137_v58 }
 0x118   :  { %v627_v6 = vrot.slane %v591_v34, 5  ;;  %v542_v38 = vpop.f32.mrb[3].mxu0  ;;  %v593_v40 = vpop.f32.mrb[3].mxu1  ;;  %v1968_v34 = vld [vmem:[%s2080_s2] ss:$0 sm:$0xff] }
 0x119   :  { %v611_v44 = vrot.slane %v542_v38, 1  ;;  %v645_v49 = vrot.slane %v593_v40, 6 }
 0x11a   :  { %v628_v51 = vsel %vm625_vm1, %v626_v22, %v627_v6 }
 0x11b   :  { %v612_v62 = vsel %vm609_vm2, %v610_v42, %v611_v44  ;;  %v646_v63 = vsel %vm643_vm3, %v644_v30, %v645_v49 }
 0x11c   :  { %v618_v2 = vadd.f32 %v612_v62, %v536_v16 }
 0x11d   :  { %v546_v4 = vpop.f32.mrb[4].mxu0  ;;  %v597_v8 = vpop.f32.mrb[4].mxu1 }
 0x11e   :  { %v636_v10 = vadd.f32 %v628_v51, %v618_v2  ;;  %v629_v12 = vrot.slane %v597_v8, 5  ;;  %v548_v14 = vpop.f32.mrb[5].mxu0  ;;  %v599_v18 = vpop.f32.mrb[5].mxu1  ;;  %v149_v51 = vadd.s32 5, %v115_v46 }
 0x11f   :  { %v613_v59 = vrot.slane %v548_v14, 1  ;;  %v647_v20 = vrot.slane %v599_v18, 6  ;;  %v550_v60 = vpop.f32.mrb[6].mxu0  ;;  %v601_v22 = vpop.f32.mrb[6].mxu1  ;;  %v154_v14 = vsel %vm148_vm11, %v151_v24, %v137_v58 }
 0x120   :  { %v654_v26 = vadd.f32 %v646_v63, %v636_v10  ;;  %v630_v61 = vsel %vm625_vm1, %v627_v6, %v629_v12  ;;  %v631_v16 = vrot.slane %v601_v22, 5  ;;  %v551_v28 = vpop.f32.mrb[7].mxu0  ;;  %v603_v30 = vpop.f32.mrb[7].mxu1  ;;  %v150_v63 = vadd.s32 5, %v126_v0 }
 0x121   :  { %v614_v38 = vsel %vm609_vm2, %v611_v44, %v613_v59  ;;  %v620_v40 = vadd.f32 %v613_v59, %v546_v4  ;;  %v648_v6 = vsel %vm643_vm3, %v645_v49, %v647_v20  ;;  %v649_v42 = vrot.slane %v603_v30, 6 }
 0x122   :  { %v619_v62 = vadd.f32 %v614_v38, %v540_v32  ;;  %v632_v2 = vsel %vm625_vm1, %v629_v12, %v631_v16  ;;  %v663_v44 = vadd.f32 %v1968_v34, %v654_v26  ;;  %v152_v32 = vsel %vm1972_vm10, %v149_v51, %v115_v46 }
 0x123   :  { %v638_v8 = vadd.f32 %v632_v2, %v620_v40  ;;  %v650_v10 = vsel %vm643_vm3, %v647_v20, %v649_v42  ;;  %v153_v18 = vsel %vm147_vm12, %v150_v63, %v126_v0  ;;  %vm1989_vm13 = vcmp.lt.s32.totalorder %v154_v14, 4 }
 0x124   :  { %v637_v4 = vadd.f32 %v630_v61, %v619_v62  ;;  %v666_v60 = vmax.f32 %v663_v44, 0.0  ;;  %vm1993_vm14 = vcmp.lt.s32.totalorder %v152_v32, 4  ;;  %vm1997_vm15 = vcmp.lt.s32.totalorder %v153_v18, 4 }
 0x125   :  { %v656_v49 = vadd.f32 %v650_v10, %v638_v8 }
 0x126   :  { %v655_v59 = vadd.f32 %v648_v6, %v637_v4  ;;  %v675_v26 = vsel %vm1993_vm14, %v666_v60, 0.0 }
 0x127   :  { %v665_v12 = vadd.f32 %v1968_v34, %v656_v49 }
 0x128   :  { %v664_v22 = vadd.f32 %v1968_v34, %v655_v59 }
 0x129   :  { %v668_v46 = vmax.f32 %v665_v12, 0.0 }
 0x12a   :  { %v667_v0 = vmax.f32 %v664_v22, 0.0 }
 0x12b   :  { %v677_v24 = vsel %vm1989_vm13, %v668_v46, 0.0 }
 0x12c   :  { %v676_v61 = vsel %vm1997_vm15, %v667_v0, 0.0  ;;  %v680_v30 = vsel %vm679_vm0, %v677_v24, 0.0 }
 0x12d   :  { %v678_v28 = vadd.f32 %v676_v61, %v675_v26 }
 0x12f   :  { %v681_v36 = vadd.f32 %v680_v30, %v678_v28 }
 0x131   :  { %v682_v38 = vrot.slane %v681_v36, 4 }
 0x133   :  { %v683_v40 = vadd.f32 %v682_v38, %v681_v36 }
 0x135   :  { %v684_v6 = vrot.slane %v683_v40, 2 }
 0x137   :  { %v685_v42 = vadd.f32 %v684_v6, %v683_v40 }
 0x139   :  { %v686_v51 = vrot.slane %v685_v42, 1 }
 0x13b   :  { %v687_v62 = vadd.f32 %v686_v51, %v685_v42 }
 0x13d   :  { %v688_v63 = vmul.f32 0.0625, %v687_v62 }
 0x13f   :  { %1189 = vmatmul.mubr.f32.vlgmr.msra.gmra.mrb[8].mxu0 %v688_v63 }
 0x140   :  { %838 = vmatpush1.bf16.msra.mxu0 %v1473_v3  ;;  %869 = vmatprep.mubr.bf16.mxu0 %v1925_v55  ;;  %v2098_v3 = vld [vmem:[#allocation5_spill] sm:$0xff] }
 0x141   :  { %839 = vmatprep.subr.bf16.mxu0 %v1486_v5  ;;  %v2099_v5 = vld [vmem:[#allocation6_spill] sm:$0xff] }
 0x144   :  { %840 = vmatpush1.bf16.msra.mxu0 %v1497_v7  ;;  %v2100_v7 = vld [vmem:[#allocation7_spill] sm:$0xff] }
 0x145   :  { %841 = vmatprep.subr.bf16.mxu0 %v1508_v9 }
 0x148   :  { %842 = vmatpush1.bf16.msra.mxu0 %v1518_v11 }
 0x149   :  { %843 = vmatprep.subr.bf16.mxu0 %v1532_v13 }
 0x14c   :  { %844 = vmatpush1.bf16.msra.mxu0 %v1544_v15 }
 0x14d   :  { %845 = vmatprep.subr.bf16.mxu0 %v1556_v17 }
 0x150   :  { %846 = vmatpush1.bf16.msra.mxu0 %v1566_v19 }
 0x151   :  { %847 = vmatprep.subr.bf16.mxu0 %v1580_v21 }
 0x154   :  { %848 = vmatpush1.bf16.msra.mxu0 %v1592_v23 }
 0x155   :  { %849 = vmatprep.subr.bf16.mxu0 %v1604_v25 }
 0x156   :  { %v820_v9 = vpop.f32.mrb[8].mxu1 }
 0x157   :  { %v822_v11 = vpop.f32.mrb[9].mxu1 }
 0x158   :  { %850 = vmatpush1.bf16.msra.mxu0 %v1614_v27  ;;  %v893_v13 = vrot.slane %v822_v11, 1  ;;  %v824_v15 = vpop.f32.mrb[10].mxu1 }
 0x159   :  { %851 = vmatprep.subr.bf16.mxu0 %v1628_v29  ;;  %v826_v17 = vpop.f32.mrb[11].mxu1 }
 0x15a   :  { %v894_v19 = vrot.slane %v826_v17, 1 }
 0x15c   :  { %852 = vmatpush1.bf16.msra.mxu0 %v1640_v31  ;;  %v895_v21 = vsel %vm609_vm2, %v893_v13, %v894_v19 }
 0x15d   :  { %853 = vmatprep.subr.bf16.mxu0 %v1652_v33  ;;  %v901_v23 = vadd.f32 %v895_v21, %v820_v9 }
 0x15e   :  { %v830_v25 = vpop.f32.mrb[12].mxu1 }
 0x15f   :  { %v832_v27 = vpop.f32.mrb[13].mxu1 }
 0x160   :  { %854 = vmatpush1.bf16.msra.mxu0 %v1662_v35  ;;  %v896_v29 = vrot.slane %v832_v27, 1  ;;  %v834_v31 = vpop.f32.mrb[14].mxu1 }
 0x161   :  { %855 = vmatprep.subr.bf16.mxu0 %v1676_v37  ;;  %v835_v33 = vpop.f32.mrb[15].mxu1 }
 0x162   :  { %v897_v35 = vsel %vm609_vm2, %v894_v19, %v896_v29  ;;  %v903_v37 = vadd.f32 %v896_v29, %v830_v25 }
 0x164   :  { %856 = vmatpush1.bf16.msra.mxu0 %v1688_v39  ;;  %v902_v39 = vadd.f32 %v897_v35, %v824_v15 }
 0x165   :  { %857 = vmatprep.subr.bf16.mxu0 %v1700_v41  ;;  %v102_v41 = vld [vmem:[%s2082_s4] sm:$0x1]  ;;  %s1421_s4 = smov [#allocation2]  }
 0x166   :  { %s1034_s18 = sshll.u32 %s1421_s4, 4  ;;  %s1035_s18 = int_to_ptr.vmem [resolvable:$true] %s1034_s18 }
 0x167   :  { %s1394_s19 = scalar_lea.vmem %s1035_s18, 32  ;;  %p1399_p1 = scmp.lt.s32.totalorder %s1035_s18, %s1035_s18 }
 0x168   :  { %858 = vmatpush1.bf16.msra.mxu0 %v1710_v43  ;;  %p1395_p0 = scmp.ne.s32.totalorder %s1035_s18, %s1394_s19  ;;  %p1400_p2 = scmp.lt.s32.totalorder %s1394_s19, %s1394_s19 }
 0x169   :  { %859 = vmatprep.subr.bf16.mxu0 %v1724_v45 }
 0x16a   :  { %p1401_p3 = por %p1400_p2, %p1399_p1 }
 0x16c   :  { %860 = vmatpush1.bf16.msra.mxu0 %v1734_v47  ;;  %p1402_p4 = pnand %p1401_p3, %p1395_p0 }
 0x16d   :  { %861 = vmatprep.subr.bf16.mxu0 %v1751_v50 }
 0x170   :  { %862 = vmatpush1.bf16.msra.mxu0 %v1763_v52 }
 0x171   :  { %863 = vmatprep.subr.bf16.mxu0 %v1773_v54 }
 0x174   :  { %864 = vmatpush1.bf16.msra.mxu0 %v1783_v56 }
 0x175   :  { %865 = vmatprep.subr.bf16.mxu0 %v2098_v3 }
 0x178   :  { %866 = vmatpush1.bf16.msra.mxu0 %v2099_v5 }
 0x179   :  { %867 = vmatprep.subr.bf16.mxu0 %v2100_v7 }
 0x17c   :  { %868 = vmatpush1.bf16.msra.mxu0 %v1819_v48 }
 0x17f   :  { %870 = vmatmul.mubr.bf16.vlgmr.msra.gmra.mrb[12].mxu0 %v1920_v53 }
 0x180   :  { %879 = vmatprep.mubr.bf16.mxu0 %v1933_v1 }
 0x187   :  { %880 = vmatmul.mubr.bf16.gmra.mrb[16].mxu0 %v1940_v57 }
 0x212   :  { %v755_v43 = vpop.f32.mrb[8].mxu0 }
 0x213   :  { %v756_v45 = vadd.f32 %v755_v43, %v102_v41  ;;  %v1190_v47 = vpop.f32.mrb[9].mxu0 }
 0x215   :  { %760 = vst.msk [vmem:[#allocation2] sm:$0x1] %vm759_vm4, %v756_v45 }
 0x252   :  { %v871_v50 = vpop.f32.mrb[12].mxu0 }
 0x253   :  { %v873_v52 = vpop.f32.mrb[13].mxu0  ;;  %v908_v56 = vrot.slane %v871_v50, 5 }
 0x254   :  { %v875_v54 = vpop.f32.mrb[14].mxu0  ;;  %v925_v55 = vrot.slane %v873_v52, 6 }
 0x255   :  { %v909_v48 = vrot.slane %v875_v54, 5  ;;  %v877_v53 = vpop.f32.mrb[15].mxu0 }
 0x256   :  { %v926_v1 = vrot.slane %v877_v53, 6 }
 0x257   :  { %v910_v57 = vsel %vm625_vm1, %v908_v56, %v909_v48 }
 0x258   :  { %v918_v2 = vadd.f32 %v910_v57, %v901_v23  ;;  %v927_v8 = vsel %vm643_vm3, %v925_v55, %v926_v1 }
 0x25a   :  { %v935_v10 = vadd.f32 %v927_v8, %v918_v2  ;;  %v881_v44 = vpop.f32.mrb[16].mxu0 }
 0x25b   :  { %v911_v4 = vrot.slane %v881_v44, 5  ;;  %v883_v14 = vpop.f32.mrb[17].mxu0 }
 0x25c   :  { %v928_v49 = vrot.slane %v883_v14, 6  ;;  %v885_v32 = vpop.f32.mrb[18].mxu0  ;;  %v938_v60 = vadd.f32 %v1968_v34, %v935_v10 }
 0x25d   :  { %v912_v18 = vsel %vm625_vm1, %v909_v48, %v911_v4  ;;  %v913_v59 = vrot.slane %v885_v32, 5  ;;  %v887_v12 = vpop.f32.mrb[19].mxu0 }
 0x25e   :  { %v919_v22 = vadd.f32 %v912_v18, %v902_v39  ;;  %v929_v46 = vsel %vm643_vm3, %v926_v1, %v928_v49  ;;  %v930_v0 = vrot.slane %v887_v12, 6  ;;  %v941_v30 = vmax.f32 %v938_v60, 0.0 }
 0x25f   :  { %v914_v24 = vsel %vm625_vm1, %v911_v4, %v913_v59 }
 0x260   :  { %v936_v26 = vadd.f32 %v929_v46, %v919_v22  ;;  %v920_v61 = vadd.f32 %v914_v24, %v903_v37  ;;  %v931_v28 = vsel %vm643_vm3, %v928_v49, %v930_v0  ;;  %v944_v42 = vsel %vm1993_vm14, %v941_v30, 0.0 }
 0x262   :  { %v939_v36 = vadd.f32 %v1968_v34, %v936_v26  ;;  %v937_v38 = vadd.f32 %v931_v28, %v920_v61 }
 0x264   :  { %v942_v40 = vmax.f32 %v939_v36, 0.0  ;;  %v940_v6 = vadd.f32 %v1968_v34, %v937_v38 }
 0x266   :  { %v945_v51 = vsel %vm1997_vm15, %v942_v40, 0.0  ;;  %v943_v62 = vmax.f32 %v940_v6, 0.0 }
 0x267   :  { %v947_v63 = vadd.f32 %v945_v51, %v944_v42 }
 0x268   :  { %v946_v3 = vsel %vm1989_vm13, %v943_v62, 0.0 }
 0x269   :  { %v948_v5 = vsel %vm679_vm0, %v946_v3, 0.0 }
 0x26a   :  { %v949_v7 = vadd.f32 %v948_v5, %v947_v63 }
 0x26c   :  { %v950_v9 = vrot.slane %v949_v7, 4 }
 0x26e   :  { %v951_v11 = vadd.f32 %v950_v9, %v949_v7 }
 0x270   :  { %v952_v13 = vrot.slane %v951_v11, 2 }
 0x272   :  { %v953_v15 = vadd.f32 %v952_v13, %v951_v11 }
 0x274   :  { %v954_v17 = vrot.slane %v953_v15, 1 }
 0x276   :  { %v955_v34 = vadd.f32 %v954_v17, %v953_v15 }
 0x278   :  { %v956_v19 = vmul.f32 0.0625, %v955_v34 }
 0x27a   :  { %1224 = vmatmul.mubr.f32.vlgmr.msra.gmra.mrb[16].mxu1 %v956_v19 }
 0x34d   :  { %v1023_v20 = vpop.f32.mrb[16].mxu1 }
 0x34e   :  { %v1024_v58 = vadd.f32 %v1023_v20, %v102_v41  ;;  %v1225_v21 = vpop.f32.mrb[17].mxu1 }
 0x350   :  { %1028 = vst.msk [vmem:[#allocation2 + $0x1] sm:$0x1] %vm759_vm4, %v1024_v58 }
 0x351   :  { %1405 = shalt.err (!%p1402_p4)
}
 0x352   :  { %s1406_s22 = scalar_lea.hbm %s2083_s5, 32 }
 0x353   :  { %p1407_p5 = scmp.ne.s32.totalorder %s2083_s5, %s1406_s22  ;;  %p1410_p6 = scmp.lt.u32.totalorder %s1406_s22, %s2083_s5 }
 0x355   :  { %p1412_p7 = pnand %p1410_p6, %p1407_p5 }
 0x357   :  { %1415 = shalt.err (!%p1412_p7)
}
 0x358   :  { %s1422_s1 = smov 16   ;;  %s1423_s27 = smov 1  }
 0x359   :  { %1040 = dma.vmem_to_hbm [thread:$0]  %s1035_s18, 32, %s2083_s5, [#allocation3], %s1422_s1, %s1422_s1, %s1423_s27  }
 0x35a   :  { %1416 = dma.done.wait [#allocation3], 32  }
 0x35b   :  { %1417 = vsyncadd [#allocation3], 4294967264 }
 0x35c   :  { %1044 = vsyncpa [#allocation3], 1 }

</bundles_post_ra>
